<compile_context>
chip_gen: v6e
topology: v6e:2x2x1
jax: 0.10.0
libtpu: 0.0.40
codegen_flags: <defaults>
</compile_context>

<pallas_src>
import jax
import jax.numpy as jnp
from jax import lax
from jax.experimental import pallas as pl
from jax.experimental.pallas import tpu as pltpu


def _bilinear_up_kernel(x_ref, xp_ref, xn_ref, w_ref, b_ref, out_ref):
    # x_ref  : (1, TH, W, Ci)   input rows of this row block
    # xp_ref : (1, 1, W, Ci)    input row max(r0-1, 0)     (top halo, clamped)
    # xn_ref : (1, 1, W, Ci)    input row min(r0+TH, H-1)  (bottom halo, clamped)
    # w_ref  : (3, 4*Ci, 2*Co)  BN-folded conv weight, one fused matrix per dy
    # b_ref  : (1, 2*Co)        BN-folded bias (even / odd halves identical)
    # out_ref: (1, TH2, W, 2*Co) fused even / odd output columns
    _, TH, W, Ci = x_ref.shape
    TH2 = 2 * TH
    Co2 = out_ref.shape[-1]

    x = x_ref[0].astype(jnp.float32)            # (TH, W, Ci)
    xp = xp_ref[0, 0].astype(jnp.float32)       # (W, Ci)
    xn = xn_ref[0, 0].astype(jnp.float32)       # (W, Ci)

    # ---- 2x bilinear row upsample (PyTorch align_corners=False) ----
    # out row 2i   = 0.25 * x[max(i-1,0)] + 0.75 * x[i]
    # out row 2i+1 = 0.75 * x[i]          + 0.25 * x[min(i+1,H-1)]
    x_prev = jnp.concatenate([xp[None], x[:-1]], axis=0)
    x_next = jnp.concatenate([x[1:], xn[None]], axis=0)
    rows_even = 0.25 * x_prev + 0.75 * x
    rows_odd = 0.75 * x + 0.25 * x_next
    # Interleave rows: only leading dims change -> free reshape.
    u = jnp.stack([rows_even, rows_odd], axis=1).reshape(TH2, W, Ci)

    # One extra upsampled row above / below for the conv's dy taps; at the
    # image top / bottom this row is the conv's zero padding.
    r = pl.program_id(1)
    top_keep = (r > 0).astype(jnp.float32)
    bot_keep = (r < pl.num_programs(1) - 1).astype(jnp.float32)
    u_top = top_keep * (0.75 * xp + 0.25 * x[0])        # upsampled row 2*r0-1
    u_bot = bot_keep * (0.25 * x[-1] + 0.75 * xn)       # upsampled row 2*(r0+TH)
    u_ext = jnp.concatenate([u_top[None], u, u_bot[None]], axis=0)  # (TH2+2, W, Ci)

    # ---- 2x bilinear column upsample, kept in polyphase form ----
    u_l = jnp.concatenate([u_ext[:, :1], u_ext[:, :-1]], axis=1)
    u_r = jnp.concatenate([u_ext[:, 1:], u_ext[:, -1:]], axis=1)
    e = 0.25 * u_l + 0.75 * u_ext           # upsampled column 2j
    o = 0.75 * u_ext + 0.25 * u_r           # upsampled column 2j+1

    # ---- tap slab for the fused conv: [o[j-1], e[j], o[j], e[j+1]] ----
    # (zero columns at the image border = the conv's zero padding)
    zc = jnp.zeros((TH2 + 2, 1, Ci), jnp.float32)
    o_left = jnp.concatenate([zc, o[:, :-1]], axis=1)
    e_right = jnp.concatenate([e[:, 1:], zc], axis=1)
    slab = jnp.concatenate(
        [o_left.astype(jnp.bfloat16), e.astype(jnp.bfloat16),
         o.astype(jnp.bfloat16), e_right.astype(jnp.bfloat16)], axis=-1)

    # ---- 3 accumulating MXU calls (dy = 0, 1, 2), K = 4*Ci, N = 2*Co ----
    # slab row (q + dy) holds upsampled row (2*r0 + q + dy - 1); the slice
    # along the outermost dim is an address offset (no relayout).
    K = slab.shape[-1]
    a0 = slab[0:TH2].reshape(TH2 * W, K)
    acc = jnp.dot(a0, w_ref[0], preferred_element_type=jnp.float32)
    for dy in (1, 2):
        a = slab[dy:dy + TH2].reshape(TH2 * W, K)
        acc = acc + jnp.dot(a, w_ref[dy], preferred_element_type=jnp.float32)

    y = jnp.maximum(acc + b_ref[...], 0.0)              # folded bias + ReLU
    out_ref[0] = y.reshape(TH2, W, Co2).astype(out_ref.dtype)


def _pick_block_rows(H, W, Ci, Co, budget_bytes):
    """Largest divisor of H whose per-step VMEM estimate fits the budget."""
    def est(th):
        th2 = 2 * th
        inp = 2 * (th + 2) * W * Ci * 4          # double-buffered input + halos
        outp = 2 * th2 * W * 2 * Co * 4          # double-buffered output block
        f32_tmp = 8 * (th2 + 2) * W * Ci * 4     # upsample / polyphase temps
        slab = (th2 + 2) * W * 4 * Ci * 2        # bf16 tap slab
        accs = 2 * th2 * W * 2 * Co * 4          # accumulator + activation
        return inp + outp + f32_tmp + slab + accs

    divs = [d for d in range(1, H + 1) if H % d == 0]
    fit = [d for d in divs if est(d) <= budget_bytes] or [1]
    th = max(fit)
    # Prefer >= 2 row blocks so the "parallel" grid can feed 2 TCs (v7x)
    # even when batch == 1.
    if H // th < 2:
        smaller = [d for d in fit if H // d >= 2]
        if smaller:
            th = max(smaller)
    return th


def bilinear_up_pallas(x, params, *, vmem_budget_bytes=16 * 1024 * 1024):
    """x: (N, H, W, Cin) NHWC.  Returns (N, 2H, 2W, Cout)."""
    (w, b, gamma, beta, mean, var, eps) = params
    N, H, W, Ci = x.shape
    Co = w.shape[-1]
    H2 = 2 * H

    # Fold eval-mode BatchNorm into the conv weight / bias (host-side, tiny).
    scale = gamma / jnp.sqrt(var + eps)                       # (Co,)
    w_bn = w * scale[None, None, None, :]                     # (3,3,Ci,Co) HWIO
    # Fused per-dy weight (4*Ci, 2*Co): even output columns read slab slots
    # [o[j-1], e[j], o[j]], odd columns read [e[j], o[j], e[j+1]], so both
    # phases come out of a single MXU call per dy.
    wf = jnp.zeros((3, 4 * Ci, 2 * Co), jnp.float32)
    wf = wf.at[:, 0 * Ci:1 * Ci, :Co].set(w_bn[:, 0])         # even, dx = 0
    wf = wf.at[:, 1 * Ci:2 * Ci, :Co].set(w_bn[:, 1])         # even, dx = 1
    wf = wf.at[:, 2 * Ci:3 * Ci, :Co].set(w_bn[:, 2])         # even, dx = 2
    wf = wf.at[:, 1 * Ci:2 * Ci, Co:].set(w_bn[:, 0])         # odd,  dx = 0
    wf = wf.at[:, 2 * Ci:3 * Ci, Co:].set(w_bn[:, 1])         # odd,  dx = 1
    wf = wf.at[:, 3 * Ci:4 * Ci, Co:].set(w_bn[:, 2])         # odd,  dx = 2
    wf = wf.astype(jnp.bfloat16)                              # bf16 MXU operands
    bn_b = (b - mean) * scale + beta
    bf = jnp.concatenate([bn_b, bn_b]).reshape(1, 2 * Co).astype(jnp.float32)

    TH = _pick_block_rows(H, W, Ci, Co, vmem_budget_bytes)
    n_rb = H // TH
    TH2 = 2 * TH

    grid_spec = pltpu.PrefetchScalarGridSpec(
        num_scalar_prefetch=0,
        grid=(N, n_rb),
        in_specs=[
            # main row block
            pl.BlockSpec((1, TH, W, Ci), lambda n, r: (n, r, 0, 0)),
            # 1-row clamped halos (block size 1 along H -> element index)
            pl.BlockSpec((1, 1, W, Ci),
                         lambda n, r: (n, jnp.maximum(r * TH - 1, 0), 0, 0)),
            pl.BlockSpec((1, 1, W, Ci),
                         lambda n, r: (n, jnp.minimum((r + 1) * TH, H - 1), 0, 0)),
            # folded conv weight / bias (resident)
            pl.BlockSpec((3, 4 * Ci, 2 * Co), lambda n, r: (0, 0, 0)),
            pl.BlockSpec((1, 2 * Co), lambda n, r: (0, 0)),
        ],
        out_specs=pl.BlockSpec((1, TH2, W, 2 * Co), lambda n, r: (n, r, 0, 0)),
    )
    y_fused = pl.pallas_call(
        _bilinear_up_kernel,
        out_shape=jax.ShapeDtypeStruct((N, H2, W, 2 * Co), jnp.float32),
        grid_spec=grid_spec,
        compiler_params=pltpu.CompilerParams(
            dimension_semantics=("parallel", "parallel"),
            vmem_limit_bytes=48 * 1024 * 1024),
    )(x, x, x, wf, bf)

    # Even/odd columns are channel-packed: (W, 2*Co) -> (2W, Co) is a pure
    # metadata reshape (contiguous), so no extra HBM interleave pass.
    return y_fused.reshape(N, H2, 2 * W, Co)


def init_params(key, in_ch, out_ch):
    ks = jax.random.split(key, 6)
    sc = 0.2
    w = jax.random.normal(ks[0], (3, 3, in_ch, out_ch), jnp.float32) * sc  # HWIO
    b = jax.random.normal(ks[1], (out_ch,), jnp.float32) * sc
    gamma = 1.0 + 0.1 * jax.random.normal(ks[2], (out_ch,), jnp.float32)
    beta = 0.1 * jax.random.normal(ks[3], (out_ch,), jnp.float32)
    mean = 0.1 * jax.random.normal(ks[4], (out_ch,), jnp.float32)
    var = jnp.abs(jax.random.normal(ks[5], (out_ch,), jnp.float32)) + 0.5
    eps = 1e-5
    return (w, b, gamma, beta, mean, var, eps)


def _upsample_bilinear_2x_ref(x):
    """NHWC 2x bilinear upsample, PyTorch align_corners=False semantics."""
    N, H, W, C = x.shape

    def idx(out_size, in_size):
        o = jnp.arange(out_size, dtype=jnp.float32)
        s = jnp.maximum((o + 0.5) * 0.5 - 0.5, 0.0)
        i0 = jnp.floor(s).astype(jnp.int32)
        i1 = jnp.minimum(i0 + 1, in_size - 1)
        lam = s - i0.astype(jnp.float32)
        return i0, i1, lam

    y0, y1, ly = idx(2 * H, H)
    x0, x1, lx = idx(2 * W, W)
    ly = ly[None, :, None, None]
    lx = lx[None, None, :, None]
    top = x[:, y0][:, :, x0] * (1.0 - lx) + x[:, y0][:, :, x1] * lx
    bot = x[:, y1][:, :, x0] * (1.0 - lx) + x[:, y1][:, :, x1] * lx
    return top * (1.0 - ly) + bot * ly


def bilinear_up_ref(x, params):
    """Pure-JAX reference mirroring the PyTorch forward (NHWC, eval BN)."""
    (w, b, gamma, beta, mean, var, eps) = params
    up = _upsample_bilinear_2x_ref(x)
    y = lax.conv_general_dilated(
        up, w, (1, 1), 'SAME',
        dimension_numbers=('NHWC', 'HWIO', 'NHWC')) + b.reshape(1, 1, 1, -1)
    y = (y - mean) / jnp.sqrt(var + eps) * gamma + beta
    return jnp.maximum(y, 0.0)


if __name__ == "__main__":
    N, H, W, Cin, Cout = 2, 16, 16, 8, 16
    key = jax.random.PRNGKey(0)
    kx, kp = jax.random.split(key)
    x = jax.random.normal(kx, (N, H, W, Cin), jnp.float32)
    params = init_params(kp, Cin, Cout)

    out = bilinear_up_pallas(x, params)
    jax.block_until_ready(out)

    ref = bilinear_up_ref(x, params)
    assert out.shape == (N, 2 * H, 2 * W, Cout)
    err = float(jnp.max(jnp.abs(out - ref)))
    # bf16 MXU operands (f32 accumulation) -> conv rounding ~1e-2 relative.
    assert err < 5e-2, f"max abs err {err}"
    print("KERNEL_OK")
</pallas_src>

<mosaic_0001>
module attributes {stable_mosaic.version = 11 : i64} {
  func.func @_bilinear_up_kernel(%arg0: i32, %arg1: i32, %arg2: memref<1x8x16x8xf32, #tpu.memory_space<vmem>>, %arg3: memref<1x1x16x8xf32, #tpu.memory_space<vmem>>, %arg4: memref<1x1x16x8xf32, #tpu.memory_space<vmem>>, %arg5: memref<3x32x32xbf16, #tpu.memory_space<vmem>>, %arg6: memref<1x32xf32, #tpu.memory_space<vmem>>, %arg7: memref<1x16x16x32xf32, #tpu.memory_space<vmem>>) attributes {dimension_semantics = [#tpu.dimension_semantics<parallel>, #tpu.dimension_semantics<parallel>], iteration_bounds = array<i64: 2, 2>, scalar_prefetch = 0 : i64, scratch_operands = 0 : i64, tpu.core_type = #tpu.core_type<tc>, window_params = [{transform_indices = @transform_0, window_bounds = array<i64: 1, 8, 16, 8>}, {transform_indices = @transform_1, window_bounds = array<i64: 1, 1, 16, 8>}, {transform_indices = @transform_2, window_bounds = array<i64: 1, 1, 16, 8>}, {pipeline_mode = #tpu.pipeline_mode<synchronous>, transform_indices = @transform_3, window_bounds = array<i64: 3, 32, 32>}, {pipeline_mode = #tpu.pipeline_mode<synchronous>, transform_indices = @transform_4, window_bounds = array<i64: 1, 32>}, {transform_indices = @transform_5, window_bounds = array<i64: 1, 16, 16, 32>}]} {
    %c0 = arith.constant 0 : index
    %c0_0 = arith.constant 0 : index
    %c0_1 = arith.constant 0 : index
    %c0_2 = arith.constant 0 : index
    %0 = vector.load %arg2[%c0, %c0_0, %c0_1, %c0_2] : memref<1x8x16x8xf32, #tpu.memory_space<vmem>>, vector<1x8x16x8xf32>
    %1 = vector.shape_cast %0 : vector<1x8x16x8xf32> to vector<8x16x8xf32>
    %c0_3 = arith.constant 0 : index
    %c0_4 = arith.constant 0 : index
    %c0_5 = arith.constant 0 : index
    %c0_6 = arith.constant 0 : index
    %2 = vector.load %arg3[%c0_3, %c0_4, %c0_5, %c0_6] : memref<1x1x16x8xf32, #tpu.memory_space<vmem>>, vector<1x1x16x8xf32>
    %3 = vector.shape_cast %2 : vector<1x1x16x8xf32> to vector<16x8xf32>
    %c0_7 = arith.constant 0 : index
    %c0_8 = arith.constant 0 : index
    %c0_9 = arith.constant 0 : index
    %c0_10 = arith.constant 0 : index
    %4 = vector.load %arg4[%c0_7, %c0_8, %c0_9, %c0_10] : memref<1x1x16x8xf32, #tpu.memory_space<vmem>>, vector<1x1x16x8xf32>
    %5 = vector.shape_cast %4 : vector<1x1x16x8xf32> to vector<16x8xf32>
    %6 = vector.shape_cast %3 : vector<16x8xf32> to vector<1x16x8xf32>
    %7 = vector.extract_strided_slice %1 {offsets = [0, 0, 0], sizes = [7, 16, 8], strides = [1, 1, 1]} : vector<8x16x8xf32> to vector<7x16x8xf32>
    %8 = tpu.concatenate %6, %7 in 0 : vector<1x16x8xf32>, vector<7x16x8xf32> -> vector<8x16x8xf32>
    %9 = vector.extract_strided_slice %1 {offsets = [1, 0, 0], sizes = [7, 16, 8], strides = [1, 1, 1]} : vector<8x16x8xf32> to vector<7x16x8xf32>
    %10 = vector.shape_cast %5 : vector<16x8xf32> to vector<1x16x8xf32>
    %11 = tpu.concatenate %9, %10 in 0 : vector<7x16x8xf32>, vector<1x16x8xf32> -> vector<8x16x8xf32>
    %cst = arith.constant 2.500000e-01 : f32
    %12 = vector.broadcast %cst : f32 to vector<8x16x8xf32>
    %13 = arith.mulf %12, %8 : vector<8x16x8xf32>
    %cst_11 = arith.constant 7.500000e-01 : f32
    %14 = vector.broadcast %cst_11 : f32 to vector<8x16x8xf32>
    %15 = arith.mulf %14, %1 : vector<8x16x8xf32>
    %16 = arith.addf %13, %15 : vector<8x16x8xf32>
    %cst_12 = arith.constant 7.500000e-01 : f32
    %17 = vector.broadcast %cst_12 : f32 to vector<8x16x8xf32>
    %18 = arith.mulf %17, %1 : vector<8x16x8xf32>
    %cst_13 = arith.constant 2.500000e-01 : f32
    %19 = vector.broadcast %cst_13 : f32 to vector<8x16x8xf32>
    %20 = arith.mulf %19, %11 : vector<8x16x8xf32>
    %21 = arith.addf %18, %20 : vector<8x16x8xf32>
    %22 = vector.shape_cast %16 : vector<8x16x8xf32> to vector<8x1x16x8xf32>
    %23 = vector.shape_cast %21 : vector<8x16x8xf32> to vector<8x1x16x8xf32>
    %24 = tpu.concatenate %22, %23 in 1 : vector<8x1x16x8xf32>, vector<8x1x16x8xf32> -> vector<8x2x16x8xf32>
    %25 = vector.shape_cast %24 : vector<8x2x16x8xf32> to vector<16x16x8xf32>
    %c0_i32 = arith.constant 0 : i32
    %26 = arith.cmpi sgt, %arg1, %c0_i32 : i32
    %27 = arith.extui %26 : i1 to i32
    %28 = arith.sitofp %27 : i32 to f32
    %c1_i32 = arith.constant 1 : i32
    %29 = arith.cmpi slt, %arg1, %c1_i32 : i32
    %30 = arith.extui %29 : i1 to i32
    %31 = arith.sitofp %30 : i32 to f32
    %cst_14 = arith.constant 7.500000e-01 : f32
    %32 = vector.broadcast %cst_14 : f32 to vector<16x8xf32>
    %33 = arith.mulf %32, %3 : vector<16x8xf32>
    %34 = vector.extract_strided_slice %1 {offsets = [0, 0, 0], sizes = [1, 16, 8], strides = [1, 1, 1]} : vector<8x16x8xf32> to vector<1x16x8xf32>
    %35 = vector.shape_cast %34 : vector<1x16x8xf32> to vector<16x8xf32>
    %cst_15 = arith.constant 2.500000e-01 : f32
    %36 = vector.broadcast %cst_15 : f32 to vector<16x8xf32>
    %37 = arith.mulf %36, %35 : vector<16x8xf32>
    %38 = arith.addf %33, %37 : vector<16x8xf32>
    %39 = vector.broadcast %28 : f32 to vector<16x8xf32>
    %40 = arith.mulf %39, %38 : vector<16x8xf32>
    %41 = vector.extract_strided_slice %1 {offsets = [7, 0, 0], sizes = [1, 16, 8], strides = [1, 1, 1]} : vector<8x16x8xf32> to vector<1x16x8xf32>
    %42 = vector.shape_cast %41 : vector<1x16x8xf32> to vector<16x8xf32>
    %cst_16 = arith.constant 2.500000e-01 : f32
    %43 = vector.broadcast %cst_16 : f32 to vector<16x8xf32>
    %44 = arith.mulf %43, %42 : vector<16x8xf32>
    %cst_17 = arith.constant 7.500000e-01 : f32
    %45 = vector.broadcast %cst_17 : f32 to vector<16x8xf32>
    %46 = arith.mulf %45, %5 : vector<16x8xf32>
    %47 = arith.addf %44, %46 : vector<16x8xf32>
    %48 = vector.broadcast %31 : f32 to vector<16x8xf32>
    %49 = arith.mulf %48, %47 : vector<16x8xf32>
    %50 = vector.shape_cast %40 : vector<16x8xf32> to vector<1x16x8xf32>
    %51 = vector.shape_cast %49 : vector<16x8xf32> to vector<1x16x8xf32>
    %52 = tpu.concatenate %50, %25, %51 in 0 : vector<1x16x8xf32>, vector<16x16x8xf32>, vector<1x16x8xf32> -> vector<18x16x8xf32>
    %53 = vector.extract_strided_slice %52 {offsets = [0, 0, 0], sizes = [18, 1, 8], strides = [1, 1, 1]} : vector<18x16x8xf32> to vector<18x1x8xf32>
    %54 = vector.extract_strided_slice %52 {offsets = [0, 0, 0], sizes = [18, 15, 8], strides = [1, 1, 1]} : vector<18x16x8xf32> to vector<18x15x8xf32>
    %55 = tpu.concatenate %53, %54 in 1 : vector<18x1x8xf32>, vector<18x15x8xf32> -> vector<18x16x8xf32>
    %56 = vector.extract_strided_slice %52 {offsets = [0, 1, 0], sizes = [18, 15, 8], strides = [1, 1, 1]} : vector<18x16x8xf32> to vector<18x15x8xf32>
    %57 = vector.extract_strided_slice %52 {offsets = [0, 15, 0], sizes = [18, 1, 8], strides = [1, 1, 1]} : vector<18x16x8xf32> to vector<18x1x8xf32>
    %58 = tpu.concatenate %56, %57 in 1 : vector<18x15x8xf32>, vector<18x1x8xf32> -> vector<18x16x8xf32>
    %cst_18 = arith.constant 2.500000e-01 : f32
    %59 = vector.broadcast %cst_18 : f32 to vector<18x16x8xf32>
    %60 = arith.mulf %59, %55 : vector<18x16x8xf32>
    %cst_19 = arith.constant 7.500000e-01 : f32
    %61 = vector.broadcast %cst_19 : f32 to vector<18x16x8xf32>
    %62 = arith.mulf %61, %52 : vector<18x16x8xf32>
    %63 = arith.addf %60, %62 : vector<18x16x8xf32>
    %cst_20 = arith.constant 7.500000e-01 : f32
    %64 = vector.broadcast %cst_20 : f32 to vector<18x16x8xf32>
    %65 = arith.mulf %64, %52 : vector<18x16x8xf32>
    %cst_21 = arith.constant 2.500000e-01 : f32
    %66 = vector.broadcast %cst_21 : f32 to vector<18x16x8xf32>
    %67 = arith.mulf %66, %58 : vector<18x16x8xf32>
    %68 = arith.addf %65, %67 : vector<18x16x8xf32>
    %cst_22 = arith.constant 0.000000e+00 : f32
    %69 = vector.broadcast %cst_22 : f32 to vector<18x1x8xf32>
    %70 = vector.extract_strided_slice %68 {offsets = [0, 0, 0], sizes = [18, 15, 8], strides = [1, 1, 1]} : vector<18x16x8xf32> to vector<18x15x8xf32>
    %71 = tpu.concatenate %69, %70 in 1 : vector<18x1x8xf32>, vector<18x15x8xf32> -> vector<18x16x8xf32>
    %72 = vector.extract_strided_slice %63 {offsets = [0, 1, 0], sizes = [18, 15, 8], strides = [1, 1, 1]} : vector<18x16x8xf32> to vector<18x15x8xf32>
    %73 = tpu.concatenate %72, %69 in 1 : vector<18x15x8xf32>, vector<18x1x8xf32> -> vector<18x16x8xf32>
    %74 = arith.truncf %71 : vector<18x16x8xf32> to vector<18x16x8xbf16>
    %75 = arith.truncf %63 : vector<18x16x8xf32> to vector<18x16x8xbf16>
    %76 = arith.truncf %68 : vector<18x16x8xf32> to vector<18x16x8xbf16>
    %77 = arith.truncf %73 : vector<18x16x8xf32> to vector<18x16x8xbf16>
    %78 = tpu.concatenate %74, %75, %76, %77 in 2 : vector<18x16x8xbf16>, vector<18x16x8xbf16>, vector<18x16x8xbf16>, vector<18x16x8xbf16> -> vector<18x16x32xbf16>
    %79 = vector.extract_strided_slice %78 {offsets = [0, 0, 0], sizes = [16, 16, 32], strides = [1, 1, 1]} : vector<18x16x32xbf16> to vector<16x16x32xbf16>
    %80 = vector.shape_cast %79 : vector<16x16x32xbf16> to vector<256x32xbf16>
    %c0_23 = arith.constant 0 : index
    %c0_24 = arith.constant 0 : index
    %c0_25 = arith.constant 0 : index
    %81 = vector.load %arg5[%c0_23, %c0_24, %c0_25] : memref<3x32x32xbf16, #tpu.memory_space<vmem>>, vector<1x32x32xbf16>
    %82 = vector.shape_cast %81 : vector<1x32x32xbf16> to vector<32x32xbf16>
    %cst_26 = arith.constant dense<0.000000e+00> : vector<256x32xf32>
    %83 = tpu.matmul %80, %82, %cst_26 {dimension_numbers = #tpu.dot_dimension_numbers<[1], [0], [0], [1], [0, 0, 1, 1], [], []>} : vector<256x32xbf16>, vector<32x32xbf16>, vector<256x32xf32> -> vector<256x32xf32>
    %84 = vector.extract_strided_slice %78 {offsets = [1, 0, 0], sizes = [16, 16, 32], strides = [1, 1, 1]} : vector<18x16x32xbf16> to vector<16x16x32xbf16>
    %85 = vector.shape_cast %84 : vector<16x16x32xbf16> to vector<256x32xbf16>
    %c1 = arith.constant 1 : index
    %c0_27 = arith.constant 0 : index
    %c0_28 = arith.constant 0 : index
    %86 = vector.load %arg5[%c1, %c0_27, %c0_28] : memref<3x32x32xbf16, #tpu.memory_space<vmem>>, vector<1x32x32xbf16>
    %87 = vector.shape_cast %86 : vector<1x32x32xbf16> to vector<32x32xbf16>
    %cst_29 = arith.constant dense<0.000000e+00> : vector<256x32xf32>
    %88 = tpu.matmul %85, %87, %cst_29 {dimension_numbers = #tpu.dot_dimension_numbers<[1], [0], [0], [1], [0, 0, 1, 1], [], []>} : vector<256x32xbf16>, vector<32x32xbf16>, vector<256x32xf32> -> vector<256x32xf32>
    %89 = arith.addf %83, %88 : vector<256x32xf32>
    %90 = vector.extract_strided_slice %78 {offsets = [2, 0, 0], sizes = [16, 16, 32], strides = [1, 1, 1]} : vector<18x16x32xbf16> to vector<16x16x32xbf16>
    %91 = vector.shape_cast %90 : vector<16x16x32xbf16> to vector<256x32xbf16>
    %c2 = arith.constant 2 : index
    %c0_30 = arith.constant 0 : index
    %c0_31 = arith.constant 0 : index
    %92 = vector.load %arg5[%c2, %c0_30, %c0_31] : memref<3x32x32xbf16, #tpu.memory_space<vmem>>, vector<1x32x32xbf16>
    %93 = vector.shape_cast %92 : vector<1x32x32xbf16> to vector<32x32xbf16>
    %cst_32 = arith.constant dense<0.000000e+00> : vector<256x32xf32>
    %94 = tpu.matmul %91, %93, %cst_32 {dimension_numbers = #tpu.dot_dimension_numbers<[1], [0], [0], [1], [0, 0, 1, 1], [], []>} : vector<256x32xbf16>, vector<32x32xbf16>, vector<256x32xf32> -> vector<256x32xf32>
    %95 = arith.addf %89, %94 : vector<256x32xf32>
    %c0_33 = arith.constant 0 : index
    %c0_34 = arith.constant 0 : index
    %96 = vector.load %arg6[%c0_33, %c0_34] : memref<1x32xf32, #tpu.memory_space<vmem>>, vector<1x32xf32>
    %97 = vector.broadcast %96 : vector<1x32xf32> to vector<256x32xf32>
    %98 = arith.addf %95, %97 : vector<256x32xf32>
    %cst_35 = arith.constant 0.000000e+00 : f32
    %99 = vector.broadcast %cst_35 : f32 to vector<256x32xf32>
    %100 = arith.maximumf %98, %99 : vector<256x32xf32>
    %101 = vector.shape_cast %100 : vector<256x32xf32> to vector<16x16x32xf32>
    %c0_36 = arith.constant 0 : index
    %c0_37 = arith.constant 0 : index
    %c0_38 = arith.constant 0 : index
    %c0_39 = arith.constant 0 : index
    %102 = vector.load %arg7[%c0_36, %c0_37, %c0_38, %c0_39] : memref<1x16x16x32xf32, #tpu.memory_space<vmem>>, vector<1x16x16x32xf32>
    %103 = vector.shape_cast %102 : vector<1x16x16x32xf32> to vector<16x16x32xf32>
    %104 = vector.shape_cast %101 : vector<16x16x32xf32> to vector<1x16x16x32xf32>
    tpu.vector_store %arg7[%c0_36, %c0_37, %c0_38, %c0_39], %104 {strides = array<i32>} : memref<1x16x16x32xf32, #tpu.memory_space<vmem>>, vector<1x16x16x32xf32>,
    return
  }
  func.func @transform_0(%arg0: i32, %arg1: i32) -> (i32, i32, i32, i32) {
    %c0_i32 = arith.constant 0 : i32
    %c0_i32_0 = arith.constant 0 : i32
    %c0_i32_1 = arith.constant 0 : i32
    return %arg0, %arg1, %c0_i32, %c0_i32_0 : i32, i32, i32, i32
  }
  func.func @transform_1(%arg0: i32, %arg1: i32) -> (i32, i32, i32, i32) {
    %c8_i32 = arith.constant 8 : i32
    %0 = arith.muli %arg1, %c8_i32 : i32
    %c1_i32 = arith.constant 1 : i32
    %1 = arith.subi %0, %c1_i32 : i32
    %c0_i32 = arith.constant 0 : i32
    %2 = arith.maxsi %1, %c0_i32 : i32
    %c0_i32_0 = arith.constant 0 : i32
    %c0_i32_1 = arith.constant 0 : i32
    %c0_i32_2 = arith.constant 0 : i32
    return %arg0, %2, %c0_i32_0, %c0_i32_1 : i32, i32, i32, i32
  }
  func.func @transform_2(%arg0: i32, %arg1: i32) -> (i32, i32, i32, i32) {
    %c1_i32 = arith.constant 1 : i32
    %0 = arith.addi %arg1, %c1_i32 : i32
    %c8_i32 = arith.constant 8 : i32
    %1 = arith.muli %0, %c8_i32 : i32
    %c15_i32 = arith.constant 15 : i32
    %2 = arith.minsi %1, %c15_i32 : i32
    %c0_i32 = arith.constant 0 : i32
    %c0_i32_0 = arith.constant 0 : i32
    %c0_i32_1 = arith.constant 0 : i32
    return %arg0, %2, %c0_i32, %c0_i32_0 : i32, i32, i32, i32
  }
  func.func @transform_3(%arg0: i32, %arg1: i32) -> (i32, i32, i32) {
    %c0_i32 = arith.constant 0 : i32
    %c0_i32_0 = arith.constant 0 : i32
    %c0_i32_1 = arith.constant 0 : i32
    %c0_i32_2 = arith.constant 0 : i32
    return %c0_i32, %c0_i32_0, %c0_i32_1 : i32, i32, i32
  }
  func.func @transform_4(%arg0: i32, %arg1: i32) -> (i32, i32) {
    %c0_i32 = arith.constant 0 : i32
    %c0_i32_0 = arith.constant 0 : i32
    %c0_i32_1 = arith.constant 0 : i32
    return %c0_i32, %c0_i32_0 : i32, i32
  }
  func.func @transform_5(%arg0: i32, %arg1: i32) -> (i32, i32, i32, i32) {
    %c0_i32 = arith.constant 0 : i32
    %c0_i32_0 = arith.constant 0 : i32
    %c0_i32_1 = arith.constant 0 : i32
    return %arg0, %arg1, %c0_i32, %c0_i32_0 : i32, i32, i32, i32
  }
}

</mosaic_0001>

<bundles_post_ra>
// kernel: tpu_custom_call.1
= control target key start
LH: loop header
LB: loop body
LE: loop exit
PB: predicated region body
PF: predicated region fallthrough
CT: control target
= control target key end

     0   :  { %10 = vsyncpa [#allocation3], 0  ;;  %s4449_s0 = inlined_call_operand.vmem [shape: f32[2,16,16,8], index: 0, kind: input, shape index: {}]   ;;  %s4450_s1 = inlined_call_operand.vmem [shape: f32[2,16,16,8], index: 1, kind: input, shape index: {}]   ;;  %s4451_s2 = inlined_call_operand.vmem [shape: f32[2,16,16,8], index: 2, kind: input, shape index: {}]   ;;  %s4452_s3 = inlined_call_operand.vmem [shape: bf16[3,32,32], index: 3, kind: input, shape index: {}]   ;;  %s4453_s4 = inlined_call_operand.vmem [shape: f32[1,32], index: 4, kind: input, shape index: {}]   ;;  %s4454_s5 = inlined_call_operand.hbm [shape: f32[2,32,16,32], index: 5, kind: output, shape index: {}]  }
   0x1   :  { %12 = vsyncpa [#allocation3 + $0x1], 0  ;;  %s2912_s18 = smov 0   ;;  %s2914_s19 = smov 0  }
   0x2   :  { %s2916_s20 = smov 0   ;;  %s2918_s21 = smov 0  }
   0x3   :  { %s2920_s22 = smov 0   ;;  %s2922_s23 = smov 0  }
   0x4   :  { %s2924_s24 = smov 0   ;;  %s2926_s25 = smov 0  }
   0x5 LB: > { %s2424_s26 = sadd.s32 4294967295, %s2875_s25   ;;  %s2425_s27 = sadd.s32 4294967294, %s2875_s25   ;;  %s2875_s25 = sphi %s2926_s25, %s18_s25   ;;  %s2871_s24 = sphi %s2924_s24, %s4521_s24   ;;  %s2867_s23 = sphi %s2922_s23, %s4520_s23   ;;  %s2863_s22 = sphi %s2920_s22, %s4519_s22   ;;  %s2859_s21 = sphi %s2918_s21, %s4518_s21   ;;  %s2855_s20 = sphi %s2916_s20, %s4517_s20   ;;  %s2851_s19 = sphi %s2914_s19, %s4516_s19   ;;  %s2847_s18 = sphi %s2912_s18, %s4515_s18  }
   0x6   : > { %s27_s28 = sadd.s32 1, %s2867_s23  ;;  %s30_s29 = sadd.s32 1, %s2871_s24 }
   0x7   : > { %p28_p0 = scmp.ge.s32.totalorder %s27_s28, 2  ;;  %p191_p1 = scmp.ne.s32.totalorder %s2855_s20, %s2851_s19 }
   0x8   : > { %p192_p2 = scmp.eq.s32.totalorder %s2424_s26, 3  ;;  %p197_p5 = scmp.ne.s32.totalorder %s2851_s19, %s2847_s18 }
   0x9   : > { %s4523_s28 = smov (%p28_p0, %s27_s28), 0  ;;  %s4525_s29 = smov (!%p28_p0, %s30_s29), %s2871_s24 }
   0xa   : > { %s177_s30 = ssub.s32 %s2867_s23, %s4523_s28  ;;  %p2963_p3 = por %p192_p2, %p191_p1 }
   0xb   : > { %p32_p4 = scmp.ge.s32.totalorder %s4525_s29, 2  ;;  %p198_p6 = scmp.eq.s32.totalorder %s2425_s27, 3 }
   0xc   : > { %p2434_p7 = scmp.ge.s32.totalorder %s2875_s25, 1  ;;  %p276_p9 = scmp.lt.s32.totalorder %s2875_s25, 5 }
   0xd   : > { %s4527_s29 = smov (%p32_p4, %s4525_s29), 0  ;;  %p2972_p8 = por %p198_p6, %p197_p5 }
   0xe   : > { %s176_s8 = ssub.s32 %s2871_s24, %s4527_s29  ;;  %s181_s9 = sadd.s32 1, %s2855_s20 }
   0xf   : > { %s178_s10 = sor.u32 %s177_s30, %s176_s8  ;;  %p277_p10 = pnand %p2434_p7, %p276_p9 }
  0x10   : > { %p179_p11 = scmp.eq.s32.totalorder %s178_s10, 0 }
  0x11   : > { %280 = sbr.rel (%p277_p10) target bundleno = 565 (0x235), region = 40 }
  0x12   : > { %s2981_s11 = scalar_select %p179_p11, %s2855_s20, %s181_s9  }
  0x16   : > { %s2984_s12 = sshll.u32 %s2859_s21, 3  ;;  %p336_p12 = scmp.lt.s32.totalorder %s2863_s22, 1  ;;  %vm635_vm0 = vcmask 1046528   ;;  %vm526_vm1 = vcmask 1040384   ;;  %vm1446_vm2 = vcmask 64512   ;;  %vm1501_vm3 = vcmask 130048  }
  0x17   : > { %p338_p13 = scmp.lt.s32.totalorder %s2984_s12, 15  ;;  %s2993_s17 = sadd.s32 4294967295, %s2984_s12  ;;  %vm1538_vm4 = vcmask 195584   ;;  %vm1596_vm5 = vcmask 261120  }
  0x18   : > { %s337_s13 = scalar_select %p336_p12, %s2863_s22, 1 }
  0x19   : > { %s339_s14 = scalar_select %p338_p13, %s2984_s12, 15 }
  0x1a   : > { %s2990_s15 = sshll.u32 %s337_s13, 5  ;;  %p348_p0 = scmp.gt.s32.totalorder %s2993_s17, 0 }
  0x1b   : > { %s2437_s16 = sshll.u32 %s339_s14, 1  ;;  %p2442_p1 = scmp.lt.s32.totalorder %s2993_s17, 15 }
  0x1c   : > { %s342_s26 = sadd.s32 %s2990_s15, %s2437_s16  ;;  %s2534_s13 = sadd.s32 8, %s2984_s12 }
  0x1d   : > { %s2439_s27 = sshll.u32 %s342_s26, 3  ;;  %p3073_p2 = scmp.lt.s32.totalorder %s2534_s13, 15 }
  0x1e   : > { %s2999_s9 = scalar_lea.vmem %s4449_s0, %s2439_s27  ;;  %s2877_s26 = smov 16  }
  0x1f   : > { %v388_v0 = vld [vmem:[%s2999_s9 + $0x30] sm:$0xff]  ;;  %v3004_v1 = vld [vmem:[%s2999_s9 + $0x38] sm:$0xff]  ;;  %v390_v2 = vld [vmem:[%s2999_s9 + $0x40] sm:$0xff]  ;;  %s349_s10 = scalar_select %p348_p0, %s2993_s17, 0 }
  0x20   : > { %v3008_v3 = vld [vmem:[%s2999_s9 + $0x48] sm:$0xff]  ;;  %v3010_v4 = vmul.f32 0.25, %v388_v0  ;;  %v3013_v5 = vmul.f32 0.25, %v3004_v1  ;;  %v3015_v6 = vmul.f32 0.25, %v390_v2  ;;  %v3017_v7 = vmul.f32 0.75, %v388_v0  ;;  %v3020_v8 = vld [vmem:[%s2999_s9 + $0x50] sm:$0xff] }
  0x21   : > { %v426_v9 = vmul.f32 0.75, %v390_v2  ;;  %v427_v10 = vmul.f32 0.75, %v3008_v3  ;;  %v3024_v11 = vld [vmem:[%s2999_s9 + $0x58] sm:$0xff]  ;;  %v3027_v12 = vld [vmem:[%s2999_s9] sm:$0xff]  ;;  %v3031_v13 = vmul.f32 0.25, %v3020_v8  ;;  %v3037_v15 = vld [vmem:[%s2999_s9 + $0x8] sm:$0xff] }
  0x22   : > { %v3034_v14 = vmul.f32 0.25, %v3024_v11  ;;  %v3040_v16 = vld [vmem:[%s2999_s9 + $0x10] sm:$0xff]  ;;  %v3043_v17 = vld [vmem:[%s2999_s9 + $0x18] sm:$0xff]  ;;  %v3050_v18 = vadd.f32 %v3017_v7, %v3015_v6  ;;  %v3058_v22 = vmul.f32 0.75, %v3027_v12  ;;  %v3070_v26 = vmul.f32 0.75, %v3037_v15  ;;  %s4529_s10 = smov (!%p2442_p1, %s349_s10), 15 }
  0x23   : > { %v442_v19 = vadd.f32 %v426_v9, %v3010_v4  ;;  %v443_v20 = vadd.f32 %v427_v10, %v3013_v5  ;;  %v3055_v21 = vmul.f32 0.25, %v3040_v16  ;;  %v3061_v23 = vadd.f32 %v426_v9, %v3031_v13  ;;  %s4531_s13 = smov (!%p3073_p2, %s2534_s13), 15  ;;  %s2447_s12 = sshll.u32 %s4529_s10, 1  ;;  %v3108_v55 = vld [vmem:[%s2999_s9 + $0x60] sm:$0xff]  ;;  %v3121_v60 = vld [vmem:[%s2999_s9 + $0x68] sm:$0xff] }
  0x24   : > { %v3064_v24 = vadd.f32 %v427_v10, %v3034_v14  ;;  %v3067_v25 = vmul.f32 0.25, %v3043_v17  ;;  %s4533_s13 = smov (!%p3073_p2, %s4531_s13), 15  ;;  %s3124_s16 = sadd.s32 %s2447_s12, %s2990_s15  ;;  %v3130_v0 = vmul.f32 0.25, %v3108_v55 }
  0x25   : > { %v663_v27 = vrot.slane %v442_v19, 1  ;;  %v664_v28 = vrot.slane %v443_v20, 1  ;;  %v798_v29 = vmul.f32 0.75, %v442_v19  ;;  %v799_v30 = vmul.f32 0.75, %v443_v20  ;;  %s3126_s17 = sshll.u32 %s4533_s13, 1  ;;  %s2878_s30 = smov 8  }
  0x26   : > { %v554_v31 = vrot.slane %v442_v19, 7  ;;  %v555_v32 = vrot.slane %v443_v20, 7  ;;  %v557_v33 = vrot.slane %v3061_v23, 7  ;;  %v558_v34 = vrot.slane %v3064_v24, 7  ;;  %s373_s27 = sadd.s32 %s3126_s17, %s2990_s15  ;;  %s2449_s8 = sshll.u32 %s3124_s16, 3 }
  0x27   : > { %v665_v35 = vsel %vm635_vm0, %v663_v27, %v664_v28  ;;  %v735_v36 = vsel %vm635_vm0, %v664_v28, %v443_v20  ;;  %v800_v37 = vmul.f32 0.75, %v3061_v23  ;;  %v801_v38 = vmul.f32 0.75, %v3064_v24  ;;  %s358_s14 = scalar_lea.vmem %s4450_s1, %s2449_s8  ;;  %s2879_s13 = smov 24  }
  0x28   : > { %v870_v39 = vmul.f32 0.25, %v665_v35  ;;  %v871_v40 = vmul.f32 0.25, %v735_v36  ;;  %v556_v41 = vsel %vm526_vm1, %v554_v31, %v555_v32  ;;  %v626_v42 = vsel %vm526_vm1, %v442_v19, %v554_v31  ;;  %p470_p4 = scmp.gt.s32.totalorder %s2859_s21, 0  ;;  %p473_p5 = scmp.lt.s32.totalorder %s2859_s21, 1 }
  0x29   : > { %v762_v43 = vmul.f32 0.25, %v626_v42  ;;  %v763_v44 = vmul.f32 0.25, %v556_v41  ;;  %v559_v45 = vsel %vm526_vm1, %v557_v33, %v558_v34  ;;  %v627_v46 = vsel %vm526_vm1, %v3061_v23, %v557_v33  ;;  %s332_s12 = sand.u32 1, %s2851_s19  }
  0x2a   : > { %v3094_v47 = vadd.f32 %v870_v39, %v798_v29  ;;  %v3096_v48 = vadd.f32 %v871_v40, %v799_v30  ;;  %v764_v49 = vmul.f32 0.25, %v627_v46  ;;  %v765_v50 = vmul.f32 0.25, %v559_v45  ;;  %s3644_s10 = scalar_select %p470_p4, 1, 0 }
  0x2b   : > { %v3099_v51 = vadd.f32 %v798_v29, %v762_v43  ;;  %v3101_v52 = vadd.f32 %v799_v30, %v763_v44  ;;  %v454_v53 = vadd.f32 %v3058_v22, %v3055_v21  ;;  %v455_v54 = vadd.f32 %v3070_v26, %v3067_v25  ;;  %s3752_s15 = scalar_select %p473_p5, 1, 0 }
  0x2c   : > { %v1257_v56 = vpack.c.bf16 %v3096_v48, %v3094_v47  ;;  %v3114_v57 = vadd.f32 %v800_v37, %v764_v49  ;;  %v3118_v59 = vadd.f32 %v801_v38, %v765_v50  ;;  %v666_v10 = vrot.slane %v3061_v23, 1  ;;  %s4397_s16 = scalar_lea.sflag [#allocation3], %s332_s12 }
  0x2d   : > { %v1239_v58 = vpack.c.bf16 %v3101_v52, %v3099_v51  ;;  %v642_v61 = vrot.slane %v454_v53, 1  ;;  %v643_v62 = vrot.slane %v455_v54, 1  ;;  %v784_v63 = vmul.f32 0.75, %v454_v53  ;;  %s475_s17 = scvt.s32.f32 %s3752_s15  ;;  %s2535_s15 = sshll.u32 %s2859_s21, 5 }
  0x2e   : > { %1374 = vrot.lane.b32.xlu1 %v1257_v56, %s2877_s26  ;;  %v1240_v2 = vpack.c.bf16 %v3118_v59, %v3114_v57  ;;  %v785_v9 = vmul.f32 0.75, %v455_v54  ;;  %v667_v19 = vrot.slane %v3064_v24, 1  ;;  %v3142_v28 = vmul.f32 0.25, %v3121_v60 }
  0x2f   : > { %1320 = vrot.lane.b32.xlu0 %v1239_v58, %s2878_s30  ;;  %v644_v20 = vsel %vm635_vm0, %v642_v61, %v643_v62  ;;  %v728_v27 = vsel %vm635_vm0, %v643_v62, %v455_v54  ;;  %v428_v29 = vmul.f32 0.75, %v3020_v8  ;;  %v429_v35 = vmul.f32 0.75, %v3024_v11 }
  0x30   : > { %v856_v30 = vmul.f32 0.25, %v644_v20  ;;  %v857_v31 = vmul.f32 0.25, %v728_v27  ;;  %v668_v32 = vsel %vm635_vm0, %v666_v10, %v667_v19  ;;  %v736_v33 = vsel %vm635_vm0, %v667_v19, %v3064_v24 }
  0x31   : > { %v872_v23 = vmul.f32 0.25, %v668_v32  ;;  %v873_v34 = vmul.f32 0.25, %v736_v33  ;;  %v3151_v36 = vadd.f32 %v428_v29, %v3130_v0  ;;  %v533_v40 = vrot.slane %v454_v53, 7 }
  0x32   : > { %v3154_v39 = vadd.f32 %v856_v30, %v784_v63  ;;  %v3156_v8 = vadd.f32 %v857_v31, %v785_v9  ;;  %v534_v41 = vrot.slane %v455_v54, 7  ;;  %v3166_v11 = vadd.f32 %v429_v35, %v3142_v28  ;;  %v3184_v54 = vld [vmem:[%s358_s14] sm:$0xff] }
  0x33   : > { %1322 = vrot.lane.b32.xlu0 %v1240_v2, %s2878_s30  ;;  %v3161_v24 = vadd.f32 %v872_v23, %v800_v37  ;;  %v3163_v42 = vadd.f32 %v873_v34, %v801_v38  ;;  %v563_v43 = vrot.slane %v3151_v36, 7  ;;  %v3170_v44 = vmul.f32 0.25, %v3008_v3  ;;  %v3186_v3 = vld [vmem:[%s358_s14 + $0x8] sm:$0xff] }
  0x34   : > { %4466 = vst [vmem:[#allocation5_spill] sm:$0xff] %v3154_v39  ;;  %v3173_v45 = vmul.f32 0.75, %v3004_v1  ;;  %v1250_v46 = vpack.c.bf16 %v3156_v8, %v3154_v39  ;;  %v564_v38 = vrot.slane %v3166_v11, 7  ;;  %v3182_v50 = vmul.f32 0.75, %v3151_v36 }
  0x35   : > { %v1258_v37 = vpack.c.bf16 %v3163_v42, %v3161_v24  ;;  %v629_v1 = vsel %vm526_vm1, %v3151_v36, %v563_v43  ;;  %v3192_v56 = vmul.f32 0.75, %v3166_v11  ;;  %v535_v58 = vsel %vm526_vm1, %v533_v40, %v534_v41 }
  0x36   : > { %1360 = vrot.lane.b32.xlu1 %v1250_v46, %s2877_s26  ;;  %v619_v61 = vsel %vm526_vm1, %v454_v53, %v533_v40  ;;  %v565_v62 = vsel %vm526_vm1, %v563_v43, %v564_v38  ;;  %v768_v2 = vmul.f32 0.25, %v629_v1  ;;  %v749_v19 = vmul.f32 0.25, %v535_v58 }
  0x37   : > { %1376 = vrot.lane.b32.xlu0 %v1258_v37, %s2877_s26  ;;  %v748_v10 = vmul.f32 0.25, %v619_v61  ;;  %v769_v20 = vmul.f32 0.25, %v565_v62  ;;  %v402_v27 = vmul.f32 0.25, %v3184_v54  ;;  %v403_v30 = vmul.f32 0.25, %v3186_v3 }
  0x38   : > { %v444_v31 = vadd.f32 %v428_v29, %v3015_v6  ;;  %v3202_v32 = vadd.f32 %v3182_v50, %v768_v2  ;;  %v3206_v53 = vadd.f32 %v785_v9, %v749_v19  ;;  %v445_v23 = vadd.f32 %v429_v35, %v3170_v44  ;;  %v2777_v35 = vld [vmem:[%s4452_s3 + $0x18] sm:$0xff]  }
  0x39   : > { %v3204_v33 = vadd.f32 %v784_v63, %v748_v10  ;;  %v3210_v34 = vadd.f32 %v3192_v56, %v769_v20  ;;  %v3213_v40 = vadd.f32 %v3058_v22, %v402_v27  ;;  %v3216_v41 = vadd.f32 %v3070_v26, %v403_v30  ;;  %2698 = vmatprep.subr.bf16.mxu1 %v2777_v35 }
  0x3a   : > { %v560_v43 = vrot.slane %v444_v31, 7  ;;  %v1131_v6 = vrot.slane %v3099_v51, 1  ;;  %v1132_v29 = vrot.slane %v3101_v52, 1  ;;  %v561_v9 = vrot.slane %v445_v23, 7  ;;  %2700 = vmatpush3.bf16.msra.mxu1 %v2777_v35  ;;  %2590 = vmatprep.subr.bf16.mxu0 %v2777_v35 }
  0x3b   : > { %v1232_v63 = vpack.c.bf16 %v3206_v53, %v3204_v33  ;;  %v1242_v22 = vpack.c.bf16 %v3210_v34, %v3202_v32  ;;  %v530_v46 = vrot.slane %v3213_v40, 7  ;;  %v531_v26 = vrot.slane %v3216_v41, 7  ;;  %2591 = vmatpush3.bf16.msra.mxu0 %v2777_v35 }
  0x3c   : > { %v3230_v37 = vmul.f32 0.75, %v3213_v40  ;;  %v3234_v51 = vmul.f32 0.75, %v3216_v41  ;;  %v562_v52 = vsel %vm526_vm1, %v560_v43, %v561_v9  ;;  %v628_v38 = vsel %vm526_vm1, %v444_v31, %v560_v43 }
  0x3d   : > { %1306 = vrot.lane.b32.xlu0 %v1232_v63, %s2878_s30  ;;  %v802_v1 = vmul.f32 0.75, %v444_v31  ;;  %1326 = vrot.lane.b32.xlu1 %v1242_v22, %s2878_s30  ;;  %v532_v58 = vsel %vm526_vm1, %v530_v46, %v531_v26  ;;  %v618_v61 = vsel %vm526_vm1, %v3213_v40, %v530_v46  ;;  %v766_v62 = vmul.f32 0.25, %v628_v38  ;;  %v2778_v22 = vld [vmem:[%s4452_s3 + $0x10] sm:$0xff]  }
  0x3e   : > { %v767_v2 = vmul.f32 0.25, %v562_v52  ;;  %v746_v19 = vmul.f32 0.25, %v618_v61  ;;  %v747_v20 = vmul.f32 0.25, %v532_v58  ;;  %v803_v27 = vmul.f32 0.75, %v445_v23  ;;  %2699 = vmatprep.subr.bf16.mxu1 %v2778_v22  ;;  %2592 = vmatprep.subr.bf16.mxu0 %v2778_v22 }
  0x3f   : > { %v1134_v30 = vrot.slane %v3114_v57, 1  ;;  %v3244_v43 = vadd.f32 %v802_v1, %v766_v62  ;;  %v669_v63 = vrot.slane %v444_v31, 1  ;;  %v670_v9 = vrot.slane %v445_v23, 1  ;;  %2701 = vmatpush3.bf16.msra.mxu1 %v2778_v22  ;;  %2593 = vmatpush3.bf16.msra.mxu0 %v2778_v22 }
  0x40   : > { %v818_v46 = vadd.f32 %v3230_v37, %v746_v19  ;;  %v819_v26 = vadd.f32 %v3234_v51, %v747_v20  ;;  %v3251_v52 = vadd.f32 %v803_v27, %v767_v2  ;;  %v1133_v38 = vsel %vm635_vm0, %v1131_v6, %v1132_v29 }
  0x41   : > { %v1203_v58 = vsel %vm635_vm0, %v1132_v29, 0.0  ;;  %v671_v57 = vsel %vm635_vm0, %v669_v63, %v670_v9  ;;  %v737_v31 = vsel %vm635_vm0, %v670_v9, %v445_v23  ;;  %v639_v61 = vrot.slane %v3213_v40, 1 }
  0x42   : > { %v1231_v62 = vpack.c.bf16 %v819_v26, %v818_v46  ;;  %v1241_v19 = vpack.c.bf16 %v3251_v52, %v3244_v43  ;;  %v874_v2 = vmul.f32 0.25, %v671_v57  ;;  %v1110_v6 = vrot.slane %v3204_v33, 1 }
  0x43   : > { %v875_v20 = vmul.f32 0.25, %v737_v31  ;;  %v640_v29 = vrot.slane %v3216_v41, 1  ;;  %v1135_v63 = vrot.slane %v3118_v59, 1  ;;  %v1107_v23 = vrot.slane %v818_v46, 1 }
  0x44   : > { %1304 = vrot.lane.b32.xlu1 %v1231_v62, %s2878_s30  ;;  %1324 = vrot.lane.b32.xlu0 %v1241_v19, %s2878_s30  ;;  %v1275_v40 = vpack.c.bf16 %v1203_v58, %v1133_v38  ;;  %v3266_v9 = vadd.f32 %v874_v2, %v802_v1  ;;  %v1111_v35 = vrot.slane %v3206_v53, 1  ;;  %v1108_v10 = vrot.slane %v819_v26, 1  ;;  %v3299_v2 = vld [vmem:[%s2999_s9 + $0x20] sm:$0xff] }
  0x45   : > { %v3269_v57 = vadd.f32 %v875_v20, %v803_v27  ;;  %v641_v33 = vsel %vm635_vm0, %v639_v61, %v640_v29  ;;  %v727_v31 = vsel %vm635_vm0, %v640_v29, %v3216_v41  ;;  %v1136_v59 = vsel %vm635_vm0, %v1134_v30, %v1135_v63 }
  0x46   : > { %v854_v22 = vmul.f32 0.25, %v641_v33  ;;  %v855_v46 = vmul.f32 0.25, %v727_v31  ;;  %v1204_v62 = vsel %vm635_vm0, %v1135_v63, 0.0  ;;  %v3280_v27 = vmul.f32 0.25, %v3027_v12  ;;  %v3307_v63 = vld [vmem:[%s2999_s9 + $0x28] sm:$0xff] }
  0x47   : > { %v1259_v53 = vpack.c.bf16 %v3269_v57, %v3266_v9  ;;  %v3283_v38 = vmul.f32 0.25, %v3037_v15  ;;  %v1276_v58 = vpack.c.bf16 %v1204_v62, %v1136_v59  ;;  %v1112_v12 = vsel %vm635_vm0, %v1110_v6, %v1111_v35 }
  0x48   : > { %1428 = vrot.lane.b32.xlu1 %v1275_v40, %s2879_s13  ;;  %v3288_v30 = vadd.f32 %v854_v22, %v3230_v37  ;;  %v3291_v26 = vadd.f32 %v855_v46, %v3234_v51  ;;  %v1196_v15 = vsel %vm635_vm0, %v1111_v35, 0.0  ;;  %v420_v61 = vmul.f32 0.75, %v3040_v16 }
  0x49   : > { %1378 = vrot.lane.b32.xlu0 %v1259_v53, %s2877_s26  ;;  %v421_v19 = vmul.f32 0.75, %v3043_v17  ;;  %v1140_v20 = vrot.slane %v3202_v32, 1  ;;  %v1109_v51 = vsel %vm635_vm0, %v1107_v23, %v1108_v10  ;;  %v1195_v29 = vsel %vm635_vm0, %v1108_v10, 0.0 }
  0x4a   : > { %v1249_v37 = vpack.c.bf16 %v3291_v26, %v3288_v30  ;;  %v436_v6 = vadd.f32 %v420_v61, %v3280_v27  ;;  %v672_v16 = vrot.slane %v3151_v36, 1  ;;  %v673_v17 = vrot.slane %v3166_v11, 1 }
  0x4b   : > { %v437_v35 = vadd.f32 %v421_v19, %v3283_v38  ;;  %v1137_v40 = vrot.slane %v3244_v43, 1  ;;  %v1268_v32 = vpack.c.bf16 %v1196_v15, %v1112_v12  ;;  %v1138_v33 = vrot.slane %v3251_v52, 1 }
  0x4c   : > { %1358 = vrot.lane.b32.xlu1 %v1249_v37, %s2877_s26  ;;  %v3317_v23 = vmul.f32 0.25, %v3299_v2  ;;  %v1267_v10 = vpack.c.bf16 %v1195_v29, %v1109_v51  ;;  %v536_v31 = vrot.slane %v436_v6, 7  ;;  %v3321_v22 = vmul.f32 0.25, %v3307_v63 }
  0x4d   : > { %1430 = vrot.lane.b32.xlu0 %v1276_v58, %s2879_s13  ;;  %v537_v59 = vrot.slane %v437_v35, 7  ;;  %v786_v36 = vmul.f32 0.75, %v436_v6  ;;  %v787_v46 = vmul.f32 0.75, %v437_v35  ;;  %v674_v43 = vsel %vm635_vm0, %v672_v16, %v673_v17 }
  0x4e   : > { %v738_v62 = vsel %vm635_vm0, %v673_v17, %v3166_v11  ;;  %v620_v53 = vsel %vm526_vm1, %v436_v6, %v536_v31  ;;  %v876_v12 = vmul.f32 0.25, %v674_v43  ;;  %v1139_v51 = vsel %vm635_vm0, %v1137_v40, %v1138_v33 }
  0x4f   : > { %v538_v52 = vsel %vm526_vm1, %v536_v31, %v537_v59  ;;  %v877_v15 = vmul.f32 0.25, %v738_v62  ;;  %v750_v58 = vmul.f32 0.25, %v620_v53  ;;  %v456_v29 = vadd.f32 %v420_v61, %v3317_v23 }
  0x50   : > { %1414 = vrot.lane.b32.xlu1 %v1268_v32, %s2879_s13  ;;  %v751_v37 = vmul.f32 0.25, %v538_v52  ;;  %v3333_v16 = vadd.f32 %v876_v12, %v3182_v50  ;;  %v1205_v17 = vsel %vm635_vm0, %v1138_v33, 0.0  ;;  %v457_v31 = vadd.f32 %v421_v19, %v3321_v22 }
  0x51   : > { %1412 = vrot.lane.b32.xlu0 %v1267_v10, %s2879_s13  ;;  %v3336_v11 = vadd.f32 %v877_v15, %v3192_v56  ;;  %v822_v59 = vadd.f32 %v786_v36, %v750_v58  ;;  %v539_v43 = vrot.slane %v456_v29, 7  ;;  %v1141_v62 = vrot.slane %v3210_v34, 1 }
  0x52   : > { %v823_v32 = vadd.f32 %v787_v46, %v751_v37  ;;  %v540_v40 = vrot.slane %v457_v31, 7  ;;  %v788_v10 = vmul.f32 0.75, %v456_v29  ;;  %v645_v52 = vrot.slane %v436_v6, 1 }
  0x53   : > { %v1260_v61 = vpack.c.bf16 %v3336_v11, %v3333_v16  ;;  %v1277_v53 = vpack.c.bf16 %v1205_v17, %v1139_v51  ;;  %v621_v56 = vsel %vm526_vm1, %v456_v29, %v539_v43  ;;  %v789_v12 = vmul.f32 0.75, %v457_v31 }
  0x54   : > { %v1233_v50 = vpack.c.bf16 %v823_v32, %v822_v59  ;;  %v1113_v15 = vrot.slane %v822_v59, 1  ;;  %v541_v19 = vsel %vm526_vm1, %v539_v43, %v540_v40  ;;  %v752_v33 = vmul.f32 0.25, %v621_v56 }
  0x55   : > { %1380 = vrot.lane.b32.xlu0 %v1260_v61, %s2877_s26  ;;  %v646_v58 = vrot.slane %v437_v35, 1  ;;  %v753_v34 = vmul.f32 0.25, %v541_v19  ;;  %v1142_v37 = vsel %vm635_vm0, %v1140_v20, %v1141_v62  ;;  %v648_v1 = vrot.slane %v456_v29, 1 }
  0x56   : > { %1308 = vrot.lane.b32.xlu1 %v1233_v50, %s2878_s30  ;;  %v649_v41 = vrot.slane %v457_v31, 1  ;;  %v824_v6 = vadd.f32 %v788_v10, %v752_v33  ;;  %v1206_v59 = vsel %vm635_vm0, %v1141_v62, 0.0  ;;  %v1114_v20 = vrot.slane %v823_v32, 1 }
  0x57   : > { %v647_v51 = vsel %vm635_vm0, %v645_v52, %v646_v58  ;;  %v729_v17 = vsel %vm635_vm0, %v646_v58, %v437_v35  ;;  %v825_v49 = vadd.f32 %v789_v12, %v753_v34  ;;  %v1278_v32 = vpack.c.bf16 %v1206_v59, %v1142_v37 }
  0x58   : > { %v858_v61 = vmul.f32 0.25, %v647_v51  ;;  %v859_v39 = vmul.f32 0.25, %v729_v17  ;;  %v650_v43 = vsel %vm635_vm0, %v648_v1, %v649_v41  ;;  %v1116_v40 = vrot.slane %v824_v6, 1 }
  0x59   : > { %v730_v50 = vsel %vm635_vm0, %v649_v41, %v457_v31  ;;  %v860_v56 = vmul.f32 0.25, %v650_v43  ;;  %v1234_v29 = vpack.c.bf16 %v825_v49, %v824_v6  ;;  %v1117_v58 = vrot.slane %v825_v49, 1 }
  0x5a   : > { %1432 = vrot.lane.b32.xlu1 %v1277_v53, %s2879_s13  ;;  %v3354_v52 = vadd.f32 %v858_v61, %v786_v36  ;;  %v3356_v35 = vadd.f32 %v859_v39, %v787_v46  ;;  %v861_v62 = vmul.f32 0.25, %v730_v50  ;;  %v3369_v39 = vld [vmem:[%s2999_s9 + $0x70] sm:$0xff]  ;;  %v3372_v46 = vld [vmem:[%s2999_s9 + $0x78] sm:$0xff]  ;;  %v1115_v49 = vsel %vm635_vm0, %v1113_v15, %v1114_v20  ;;  %s2456_s9 = sshll.u32 %s373_s27, 3 }
  0x5b   : > { %v3360_v1 = vadd.f32 %v860_v56, %v788_v10  ;;  %1310 = vrot.lane.b32.xlu0 %v1234_v29, %s2878_s30  ;;  %v1118_v53 = vsel %vm635_vm0, %v1116_v40, %v1117_v58  ;;  %v1198_v10 = vsel %vm635_vm0, %v1117_v58, 0.0  ;;  %v1197_v34 = vsel %vm635_vm0, %v1114_v20, 0.0  ;;  %s375_s27 = scalar_lea.vmem %s4451_s2, %s2456_s9  ;;  %s472_s9 = scvt.s32.f32 %s3644_s10 }
  0x5c   : > { %v1251_v31 = vpack.c.bf16 %v3356_v35, %v3354_v52  ;;  %v3366_v36 = vadd.f32 %v861_v62, %v789_v12  ;;  %v430_v37 = vmul.f32 0.75, %v3108_v55  ;;  %v431_v17 = vmul.f32 0.75, %v3121_v60  ;;  %s2435_s10 = sshll.u32 %s332_s12, 8 }
  0x5d   : > { %v3386_v59 = vmul.f32 0.25, %v3369_v39  ;;  %v3389_v15 = vmul.f32 0.25, %v3372_v46  ;;  %v3392_v61 = vmul.f32 0.75, %v3299_v2  ;;  %v1270_v43 = vpack.c.bf16 %v1198_v10, %v1118_v53 }
  0x5e   : > { %1362 = vrot.lane.b32.xlu1 %v1251_v31, %s2877_s26  ;;  %v1252_v12 = vpack.c.bf16 %v3366_v36, %v3360_v1  ;;  %v1269_v40 = vpack.c.bf16 %v1197_v34, %v1115_v49  ;;  %v446_v50 = vadd.f32 %v430_v37, %v3031_v13  ;;  %v3397_v56 = vmul.f32 0.75, %v3307_v63 }
  0x5f   : > { %4467 = vst [vmem:[#allocation6_spill] sm:$0xff] %v3386_v59  ;;  %4468 = vst [vmem:[#allocation7_spill] sm:$0xff] %v3389_v15  ;;  %1434 = vrot.lane.b32.xlu0 %v1278_v32, %s2879_s13  ;;  %v3400_v55 = vadd.f32 %v3386_v59, %v430_v37  ;;  %v3403_v60 = vadd.f32 %v3389_v15, %v431_v17  ;;  %v447_v20 = vadd.f32 %v431_v17, %v3034_v14 }
  0x60   : > { %v3408_v2 = vadd.f32 %v3392_v61, %v3055_v21  ;;  %v566_v29 = vrot.slane %v446_v50, 7  ;;  %v806_v62 = vmul.f32 0.75, %v446_v50  ;;  %v3413_v13 = vadd.f32 %v3397_v56, %v3067_v25 }
  0x61   : > { %v675_v63 = vrot.slane %v446_v50, 1  ;;  %v569_v58 = vrot.slane %v3400_v55, 7  ;;  %v570_v31 = vrot.slane %v3403_v60, 7  ;;  %v3418_v32 = vmul.f32 0.75, %v3400_v55 }
  0x62   : > { %1364 = vrot.lane.b32.xlu1 %v1252_v12, %s2877_s26  ;;  %v3421_v14 = vmul.f32 0.75, %v3403_v60  ;;  %v567_v21 = vrot.slane %v447_v20, 7  ;;  %v630_v53 = vsel %vm526_vm1, %v446_v50, %v566_v29  ;;  %v807_v10 = vmul.f32 0.75, %v447_v20 }
  0x63   : > { %1416 = vrot.lane.b32.xlu0 %v1269_v40, %s2879_s13  ;;  %v542_v25 = vrot.slane %v3408_v2, 7  ;;  %v571_v49 = vsel %vm526_vm1, %v569_v58, %v570_v31  ;;  %v631_v34 = vsel %vm526_vm1, %v3400_v55, %v569_v58  ;;  %v770_v12 = vmul.f32 0.25, %v630_v53 }
  0x64   : > { %v543_v37 = vrot.slane %v3413_v13, 7  ;;  %v772_v17 = vmul.f32 0.25, %v631_v34  ;;  %v773_v33 = vmul.f32 0.25, %v571_v49  ;;  %v568_v40 = vsel %vm526_vm1, %v566_v29, %v567_v21 }
  0x65   : > { %v622_v50 = vsel %vm526_vm1, %v3408_v2, %v542_v25  ;;  %v771_v41 = vmul.f32 0.25, %v568_v40  ;;  %v842_v6 = vadd.f32 %v806_v62, %v770_v12  ;;  %v791_v21 = vmul.f32 0.75, %v3413_v13 }
  0x66   : > { %1418 = vrot.lane.b32.xlu1 %v1270_v43, %s2879_s13  ;;  %v544_v51 = vsel %vm526_vm1, %v542_v25, %v543_v37  ;;  %v754_v31 = vmul.f32 0.25, %v622_v50  ;;  %v3436_v19 = vadd.f32 %v3418_v32, %v772_v17  ;;  %v3439_v58 = vadd.f32 %v3421_v14, %v773_v33 }
  0x67   : > { %v755_v53 = vmul.f32 0.25, %v544_v51  ;;  %v790_v43 = vmul.f32 0.75, %v3408_v2  ;;  %v843_v29 = vadd.f32 %v807_v10, %v771_v41  ;;  %v676_v34 = vrot.slane %v447_v20, 1 }
  0x68   : > { %v1244_v12 = vpack.c.bf16 %v3439_v58, %v3436_v19  ;;  %v1143_v25 = vrot.slane %v842_v6, 1  ;;  %v678_v17 = vrot.slane %v3400_v55, 1  ;;  %v679_v55 = vrot.slane %v3403_v60, 1 }
  0x69   : > { %v3446_v37 = vadd.f32 %v790_v43, %v754_v31  ;;  %v1243_v40 = vpack.c.bf16 %v843_v29, %v842_v6  ;;  %v3449_v33 = vadd.f32 %v791_v21, %v755_v53  ;;  %v677_v51 = vsel %vm635_vm0, %v675_v63, %v676_v34 }
  0x6a   : > { %v739_v50 = vsel %vm635_vm0, %v676_v34, %v447_v20  ;;  %1330 = vrot.lane.b32.xlu1 %v1244_v12, %s2878_s30  ;;  %v878_v49 = vmul.f32 0.25, %v677_v51  ;;  %v1144_v59 = vrot.slane %v843_v29, 1  ;;  %v651_v63 = vrot.slane %v3408_v2, 1 }
  0x6b   : > { %v879_v15 = vmul.f32 0.25, %v739_v50  ;;  %1328 = vrot.lane.b32.xlu0 %v1243_v40, %s2878_s30  ;;  %v1235_v6 = vpack.c.bf16 %v3449_v33, %v3446_v37  ;;  %v652_v20 = vrot.slane %v3413_v13, 1  ;;  %v680_v40 = vsel %vm635_vm0, %v678_v17, %v679_v55 }
  0x6c   : > { %v3461_v31 = vadd.f32 %v878_v49, %v806_v62  ;;  %v1145_v34 = vsel %vm635_vm0, %v1143_v25, %v1144_v59  ;;  %v1207_v12 = vsel %vm635_vm0, %v1144_v59, 0.0  ;;  %v740_v51 = vsel %vm635_vm0, %v679_v55, %v3403_v60 }
  0x6d   : > { %v3463_v53 = vadd.f32 %v879_v15, %v807_v10  ;;  %v653_v50 = vsel %vm635_vm0, %v651_v63, %v652_v20  ;;  %v1279_v62 = vpack.c.bf16 %v1207_v12, %v1145_v34  ;;  %v880_v59 = vmul.f32 0.25, %v680_v40 }
  0x6e   : > { %4469 = vst [vmem:[#allocation8_spill] sm:$0xff] %v3461_v31  ;;  %1312 = vrot.lane.b32.xlu1 %v1235_v6, %s2878_s30  ;;  %v881_v10 = vmul.f32 0.25, %v740_v51  ;;  %v731_v49 = vsel %vm635_vm0, %v652_v20, %v3413_v13  ;;  %v862_v25 = vmul.f32 0.25, %v653_v50  ;;  %v458_v60 = vadd.f32 %v3392_v61, %v3010_v4  ;;  %v3506_v51 = vld [vmem:[%s375_s27] sm:$0xff] }
  0x6f   : > { %v1261_v15 = vpack.c.bf16 %v3463_v53, %v3461_v31  ;;  %v3486_v55 = vadd.f32 %v880_v59, %v3418_v32  ;;  %v863_v6 = vmul.f32 0.25, %v731_v49  ;;  %v459_v63 = vadd.f32 %v3397_v56, %v3013_v5 }
  0x70   : > { %v1146_v13 = vrot.slane %v3436_v19, 1  ;;  %v3495_v20 = vadd.f32 %v881_v10, %v3421_v14  ;;  %v3497_v4 = vadd.f32 %v862_v25, %v790_v43  ;;  %v545_v61 = vrot.slane %v458_v60, 7  ;;  %v3518_v25 = vld [vmem:[%s375_s27 + $0x8] sm:$0xff] }
  0x71   : > { %1382 = vrot.lane.b32.xlu0 %v1261_v15, %s2877_s26  ;;  %v3500_v32 = vadd.f32 %v863_v6, %v791_v21  ;;  %v546_v34 = vrot.slane %v459_v63, 7  ;;  %v792_v12 = vmul.f32 0.75, %v458_v60  ;;  %v1147_v5 = vrot.slane %v3439_v58, 1 }
  0x72   : > { %1436 = vrot.lane.b32.xlu1 %v1279_v62, %s2879_s13  ;;  %v1262_v56 = vpack.c.bf16 %v3495_v20, %v3486_v55  ;;  %v623_v40 = vsel %vm526_vm1, %v458_v60, %v545_v61  ;;  %v793_v19 = vmul.f32 0.75, %v459_v63  ;;  %v432_v14 = vmul.f32 0.75, %v3369_v39 }
  0x73   : > { %v1119_v43 = vrot.slane %v3446_v37, 1  ;;  %v1253_v21 = vpack.c.bf16 %v3500_v32, %v3497_v4  ;;  %v547_v50 = vsel %vm526_vm1, %v545_v61, %v546_v34  ;;  %v756_v15 = vmul.f32 0.25, %v623_v40 }
  0x74   : > { %v757_v58 = vmul.f32 0.25, %v547_v50  ;;  %v654_v62 = vrot.slane %v458_v60, 1  ;;  %v655_v59 = vrot.slane %v459_v63, 1  ;;  %v433_v10 = vmul.f32 0.75, %v3372_v46  ;;  %v3527_v46 = vld [vmem:[%s4452_s3 + $0x8] sm:$0xff]  }
  0x75   : > { %1384 = vrot.lane.b32.xlu0 %v1262_v56, %s2877_s26  ;;  %v828_v49 = vadd.f32 %v792_v12, %v756_v15  ;;  %v1148_v39 = vsel %vm635_vm0, %v1146_v13, %v1147_v5  ;;  %v1120_v37 = vrot.slane %v3449_v33, 1  ;;  %v452_v6 = vmul.f32 0.25, %v3506_v51  ;;  %4470 = vst [vmem:[#allocation9_spill] sm:$0xff] %v3527_v46  ;;  %v3533_v50 = vld [vmem:[%s4452_s3 + $0x28] sm:$0xff]   ;;  %2626 = vmatprep.subr.bf16.mxu1 %v3527_v46 }
  0x76   : > { %1366 = vrot.lane.b32.xlu1 %v1253_v21, %s2877_s26  ;;  %v829_v61 = vadd.f32 %v793_v19, %v757_v58  ;;  %v656_v34 = vsel %vm635_vm0, %v654_v62, %v655_v59  ;;  %v732_v56 = vsel %vm635_vm0, %v655_v59, %v459_v63  ;;  %v1208_v60 = vsel %vm635_vm0, %v1147_v5, 0.0  ;;  %4471 = vst [vmem:[#allocation10_spill] sm:$0xff] %v3533_v50 }
  0x77   : > { %v1122_v40 = vrot.slane %v828_v49, 1  ;;  %v864_v13 = vmul.f32 0.25, %v656_v34  ;;  %v865_v21 = vmul.f32 0.25, %v732_v56  ;;  %v1121_v33 = vsel %vm635_vm0, %v1119_v43, %v1120_v37  ;;  %2662 = vmatprep.subr.bf16.mxu0 %v3533_v50 }
  0x78   : > { %v1236_v15 = vpack.c.bf16 %v829_v61, %v828_v49  ;;  %v1123_v58 = vrot.slane %v829_v61, 1  ;;  %v1199_v63 = vsel %vm635_vm0, %v1120_v37, 0.0  ;;  %v453_v5 = vmul.f32 0.25, %v3518_v25 }
  0x79   : > { %v3538_v62 = vadd.f32 %v864_v13, %v792_v12  ;;  %v3540_v59 = vadd.f32 %v865_v21, %v793_v19  ;;  %v1280_v34 = vpack.c.bf16 %v1208_v60, %v1148_v39  ;;  %v3542_v56 = vadd.f32 %v452_v6, %v432_v14 }
  0x7a   : > { %1314 = vrot.lane.b32.xlu0 %v1236_v15, %s2878_s30  ;;  %v1124_v43 = vsel %vm635_vm0, %v1122_v40, %v1123_v58  ;;  %v1200_v49 = vsel %vm635_vm0, %v1123_v58, 0.0  ;;  %v3548_v37 = vadd.f32 %v453_v5, %v433_v10  ;;  %v448_v61 = vadd.f32 %v432_v14, %v3130_v0 }
  0x7b   : > { %v1254_v19 = vpack.c.bf16 %v3540_v59, %v3538_v62  ;;  %v1272_v39 = vpack.c.bf16 %v1200_v49, %v1124_v43  ;;  %v1271_v6 = vpack.c.bf16 %v1199_v63, %v1121_v33  ;;  %v575_v60 = vrot.slane %v3542_v56, 7 }
  0x7c   : > { %v576_v13 = vrot.slane %v3548_v37, 7  ;;  %v3557_v21 = vmul.f32 0.75, %v3542_v56  ;;  %v3560_v40 = vmul.f32 0.75, %v3548_v37  ;;  %v449_v0 = vadd.f32 %v433_v10, %v3142_v28 }
  0x7d   : > { %1368 = vrot.lane.b32.xlu1 %v1254_v19, %s2877_s26  ;;  %v572_v14 = vrot.slane %v448_v61, 7  ;;  %v810_v15 = vmul.f32 0.75, %v448_v61  ;;  %v440_v58 = vadd.f32 %v3017_v7, %v3317_v23  ;;  %v633_v63 = vsel %vm526_vm1, %v3542_v56, %v575_v60 }
  0x7e   : > { %1438 = vrot.lane.b32.xlu0 %v1280_v34, %s2879_s13  ;;  %v577_v33 = vsel %vm526_vm1, %v575_v60, %v576_v13  ;;  %v441_v5 = vadd.f32 %v3173_v45, %v3321_v22  ;;  %v681_v43 = vrot.slane %v448_v61, 1  ;;  %v776_v49 = vmul.f32 0.25, %v633_v63 }
  0x7f   : > { %v777_v19 = vmul.f32 0.25, %v577_v33  ;;  %v573_v17 = vrot.slane %v449_v0, 7  ;;  %v632_v28 = vsel %vm526_vm1, %v448_v61, %v572_v14  ;;  %v811_v12 = vmul.f32 0.75, %v449_v0 }
  0x80   : > { %v774_v10 = vmul.f32 0.25, %v632_v28  ;;  %v548_v29 = vrot.slane %v440_v58, 7  ;;  %v549_v7 = vrot.slane %v441_v5, 7  ;;  %v3575_v23 = vadd.f32 %v3557_v21, %v776_v49 }
  0x81   : > { %1422 = vrot.lane.b32.xlu1 %v1272_v39, %s2879_s13  ;;  %v3578_v34 = vadd.f32 %v3560_v40, %v777_v19  ;;  %v574_v22 = vsel %vm526_vm1, %v572_v14, %v573_v17  ;;  %v794_v60 = vmul.f32 0.75, %v440_v58  ;;  %v795_v50 = vmul.f32 0.75, %v441_v5 }
  0x82   : > { %1420 = vrot.lane.b32.xlu0 %v1271_v6, %s2879_s13  ;;  %v775_v13 = vmul.f32 0.25, %v574_v22  ;;  %v846_v33 = vadd.f32 %v810_v15, %v774_v10  ;;  %v550_v61 = vsel %vm526_vm1, %v548_v29, %v549_v7  ;;  %v624_v63 = vsel %vm526_vm1, %v440_v58, %v548_v29 }
  0x83   : > { %v1246_v39 = vpack.c.bf16 %v3578_v34, %v3575_v23  ;;  %v758_v49 = vmul.f32 0.25, %v624_v63  ;;  %v759_v2 = vmul.f32 0.25, %v550_v61  ;;  %v682_v17 = vrot.slane %v449_v0, 1 }
  0x84   : > { %v847_v19 = vadd.f32 %v811_v12, %v775_v13  ;;  %v1149_v41 = vrot.slane %v846_v33, 1  ;;  %v684_v14 = vrot.slane %v3542_v56, 1  ;;  %v685_v10 = vrot.slane %v3548_v37, 1 }
  0x85   : > { %1334 = vrot.lane.b32.xlu1 %v1246_v39, %s2878_s30  ;;  %v3588_v6 = vadd.f32 %v794_v60, %v758_v49  ;;  %v657_v29 = vrot.slane %v440_v58, 1  ;;  %v3592_v22 = vadd.f32 %v795_v50, %v759_v2  ;;  %v683_v28 = vsel %vm635_vm0, %v681_v43, %v682_v17 }
  0x86   : > { %v1245_v7 = vpack.c.bf16 %v847_v19, %v846_v33  ;;  %v741_v61 = vsel %vm635_vm0, %v682_v17, %v449_v0  ;;  %v1000_v13 = vrot.slane %v3463_v53, 7  ;;  %v882_v63 = vmul.f32 0.25, %v683_v28 }
  0x87   : > { %v883_v46 = vmul.f32 0.25, %v741_v61  ;;  %v1150_v31 = vrot.slane %v847_v19, 1  ;;  %v1237_v56 = vpack.c.bf16 %v3592_v22, %v3588_v6  ;;  %v686_v39 = vsel %vm635_vm0, %v684_v14, %v685_v10 }
  0x88   : > { %1332 = vrot.lane.b32.xlu0 %v1245_v7, %s2878_s30  ;;  %v742_v2 = vsel %vm635_vm0, %v685_v10, %v3548_v37  ;;  %v658_v58 = vrot.slane %v441_v5, 1  ;;  %v3603_v33 = vadd.f32 %v882_v63, %v810_v15  ;;  %v884_v19 = vmul.f32 0.25, %v686_v39 }
  0x89   : > { %v3605_v43 = vadd.f32 %v883_v46, %v811_v12  ;;  %v1151_v0 = vsel %vm635_vm0, %v1149_v41, %v1150_v31  ;;  %v1209_v28 = vsel %vm635_vm0, %v1150_v31, 0.0  ;;  %1316 = vrot.lane.b32.xlu1 %v1237_v56, %s2878_s30  ;;  %v885_v17 = vmul.f32 0.25, %v742_v2 }
  0x8a   : > { %v1281_v49 = vpack.c.bf16 %v1209_v28, %v1151_v0  ;;  %v659_v14 = vsel %vm635_vm0, %v657_v29, %v658_v58  ;;  %v1002_v7 = vrot.slane %v3486_v55, 7  ;;  %v1003_v37 = vrot.slane %v3495_v20, 7  ;;  %v4500_v20 = vld [vmem:[#allocation7_spill] sm:$0xff] }
  0x8b   : > { %v1263_v46 = vpack.c.bf16 %v3605_v43, %v3603_v33  ;;  %v733_v12 = vsel %vm635_vm0, %v658_v58, %v441_v5  ;;  %v3617_v41 = vadd.f32 %v884_v19, %v3557_v21  ;;  %v3620_v31 = vadd.f32 %v885_v17, %v3560_v40 }
  0x8c   : > { %v866_v15 = vmul.f32 0.25, %v659_v14  ;;  %v867_v10 = vmul.f32 0.25, %v733_v12  ;;  %v1152_v61 = vrot.slane %v3575_v23, 1  ;;  %v461_v63 = vadd.f32 %v3173_v45, %v3170_v44 }
  0x8d   : > { %1386 = vrot.lane.b32.xlu0 %v1263_v46, %s2877_s26  ;;  %v551_v5 = vrot.slane %v3050_v18, 7  ;;  %1440 = vrot.lane.b32.xlu1 %v1281_v49, %s2879_s13  ;;  %v1264_v21 = vpack.c.bf16 %v3620_v31, %v3617_v41  ;;  %v796_v56 = vmul.f32 0.75, %v3050_v18  ;;  %v660_v39 = vrot.slane %v3050_v18, 1 }
  0x8e   : > { %v3632_v40 = vadd.f32 %v866_v15, %v794_v60  ;;  %v1125_v23 = vrot.slane %v3588_v6, 1  ;;  %v3637_v2 = vadd.f32 %v867_v10, %v795_v50  ;;  %v552_v58 = vrot.slane %v461_v63, 7 }
  0x8f   : > { %v625_v44 = vsel %vm526_vm1, %v3050_v18, %v551_v5  ;;  %v797_v0 = vmul.f32 0.75, %v461_v63  ;;  %v661_v28 = vrot.slane %v461_v63, 1  ;;  %v1153_v49 = vrot.slane %v3578_v34, 1 }
  0x90   : > { %v760_v45 = vmul.f32 0.25, %v625_v44  ;;  %v976_v60 = vrot.slane %v3500_v32, 7  ;;  %v1255_v50 = vpack.c.bf16 %v3637_v2, %v3632_v40  ;;  %v553_v6 = vsel %vm526_vm1, %v551_v5, %v552_v58 }
  0x91   : > { %1388 = vrot.lane.b32.xlu0 %v1264_v21, %s2877_s26  ;;  %v1126_v18 = vrot.slane %v3592_v22, 1  ;;  %v761_v19 = vmul.f32 0.25, %v553_v6  ;;  %v662_v14 = vsel %vm635_vm0, %v660_v39, %v661_v28  ;;  %v734_v34 = vsel %vm635_vm0, %v661_v28, %v461_v63 }
  0x92   : > { %v832_v17 = vadd.f32 %v796_v56, %v760_v45  ;;  %1370 = vrot.lane.b32.xlu1 %v1255_v50, %s2877_s26  ;;  %v868_v46 = vmul.f32 0.25, %v662_v14  ;;  %v869_v12 = vmul.f32 0.25, %v734_v34  ;;  %v1154_v15 = vsel %vm635_vm0, %v1152_v61, %v1153_v49 }
  0x93   : > { %v1210_v10 = vsel %vm635_vm0, %v1153_v49, 0.0  ;;  %v833_v21 = vadd.f32 %v797_v0, %v761_v19  ;;  %v1127_v5 = vsel %vm635_vm0, %v1125_v23, %v1126_v18  ;;  %v1201_v63 = vsel %vm635_vm0, %v1126_v18, 0.0 }
  0x94   : > { %v1128_v44 = vrot.slane %v832_v17, 1  ;;  %v1282_v29 = vpack.c.bf16 %v1210_v10, %v1154_v15  ;;  %v3659_v22 = vadd.f32 %v868_v46, %v796_v56  ;;  %v3661_v58 = vadd.f32 %v869_v12, %v797_v0 }
  0x95   : > { %v476_v39 = vmul.f32 0.75, %v3184_v54  ;;  %v1238_v45 = vpack.c.bf16 %v833_v21, %v832_v17  ;;  %v1129_v28 = vrot.slane %v833_v21, 1  ;;  %v1273_v50 = vpack.c.bf16 %v1201_v63, %v1127_v5 }
  0x96   : > { %v477_v61 = vmul.f32 0.75, %v3186_v3  ;;  %v978_v49 = vrot.slane %v3538_v62, 7  ;;  %v979_v6 = vrot.slane %v3540_v59, 7  ;;  %v1256_v23 = vpack.c.bf16 %v3661_v58, %v3659_v22 }
  0x97   : > { %v478_v56 = vadd.f32 %v476_v39, %v3280_v27  ;;  %1318 = vrot.lane.b32.xlu0 %v1238_v45, %s2878_s30  ;;  %v1130_v0 = vsel %vm635_vm0, %v1128_v44, %v1129_v28  ;;  %v1202_v54 = vsel %vm635_vm0, %v1129_v28, 0.0  ;;  %v480_v19 = vstv %s472_s9  ;;  %s4264_s9 = scalar_lea.vmem [#allocation2], %s2435_s10  ;;  %s2880_s10 = smov [#allocation2]  }
  0x98   : > { %v479_v18 = vadd.f32 %v477_v61, %v3283_v38  ;;  %1372 = vrot.lane.b32.xlu1 %v1256_v23, %s2877_s26  ;;  %v1274_v3 = vpack.c.bf16 %v1202_v54, %v1130_v0  ;;  %v4472_v14 = vrot.slane %v3096_v48, 7  ;;  %v4473_v34 = vrot.slane %v3094_v47, 7 }
  0x99   : > { %v481_v17 = vmul.f32 %v480_v19, %v478_v56  ;;  %v1005_v15 = vrot.slane %v3603_v33, 7  ;;  %v4475_v21 = vrot.slane %v3163_v42, 7  ;;  %v4476_v48 = vrot.slane %v3161_v24, 7 }
  0x9a   : > { %v3681_v46 = vsel %vm526_vm1, %v4473_v34, %v4472_v14  ;;  %v4474_v27 = vmov %v4473_v34  ;;  %v482_v38 = vmul.f32 %v480_v19, %v479_v18  ;;  %v1006_v5 = vrot.slane %v3605_v43, 7 }
  0x9b   : > { %v3686_v12 = vsel %vm526_vm1, 0.0, %v4474_v27  ;;  %v3696_v44 = vsel %vm526_vm1, %v4476_v48, %v4475_v21  ;;  %v527_v47 = vrot.slane %v481_v17, 7  ;;  %v636_v63 = vrot.slane %v481_v17, 1  ;;  %1442 = vrot.lane.b32.xlu0 %v1282_v29, %s2879_s13 }
  0x9c   : > { %v1221_v10 = vpack.c.bf16 %v3681_v46, %v3686_v12  ;;  %v4477_v39 = vmov %v4476_v48  ;;  %v528_v28 = vrot.slane %v482_v38, 7  ;;  %v780_v61 = vmul.f32 0.75, %v481_v17  ;;  %1426 = vrot.lane.b32.xlu1 %v1274_v3, %s2879_s13 }
  0x9d   : > { %v3702_v45 = vsel %vm526_vm1, 0.0, %v4477_v39  ;;  %v637_v42 = vrot.slane %v482_v38, 1  ;;  %v1008_v0 = vrot.slane %v3617_v41, 7  ;;  %v617_v54 = vsel %vm526_vm1, %v481_v17, %v527_v47 }
  0x9e   : > { %v1222_v56 = vpack.c.bf16 %v3696_v44, %v3702_v45  ;;  %v781_v18 = vmul.f32 0.75, %v482_v38  ;;  %v4478_v24 = vrot.slane %v3336_v11, 7  ;;  %v4479_v19 = vrot.slane %v3333_v16, 7 }
  0x9f   : > { %v529_v14 = vsel %vm526_vm1, %v527_v47, %v528_v28  ;;  %v744_v34 = vmul.f32 0.25, %v617_v54  ;;  %v638_v46 = vsel %vm635_vm0, %v636_v63, %v637_v42  ;;  %v726_v27 = vsel %vm635_vm0, %v637_v42, %v482_v38  ;;  %1424 = vrot.lane.b32.xlu0 %v1273_v50, %s2879_s13  ;;  %v4482_v63 = vld [vmem:[#allocation5_spill] sm:$0xff] }
  0xa0   : > { %v3715_v29 = vsel %vm526_vm1, %v4479_v19, %v4478_v24  ;;  %v745_v3 = vmul.f32 0.25, %v529_v14  ;;  %v852_v12 = vmul.f32 0.25, %v638_v46  ;;  %v853_v17 = vmul.f32 0.25, %v726_v27  ;;  %v3746_v14 = vpop.permute.xlu1 %1374 }
  0xa1   : > { %v1321_v23 = vpop.permute.xlu0 %1320  ;;  %v4480_v21 = vmov %v4479_v19  ;;  %v816_v48 = vadd.f32 %v780_v61, %v744_v34  ;;  %v4481_v39 = vrot.slane %v3156_v8, 7  ;;  %v4483_v28 = vrot.slane %v4482_v63, 7 }
  0xa2   : > { %v3724_v11 = vsel %vm526_vm1, 0.0, %v4480_v21  ;;  %v1009_v54 = vrot.slane %v3620_v31, 7  ;;  %v817_v24 = vadd.f32 %v781_v18, %v745_v3  ;;  %v3742_v50 = vadd.f32 %v852_v12, %v780_v61 }
  0xa3   : > { %v3734_v38 = vsel %vm526_vm1, %v4483_v28, %v4481_v39  ;;  %v4484_v42 = vmov %v4483_v28  ;;  %v3744_v19 = vadd.f32 %v853_v17, %v781_v18  ;;  %v1104_v34 = vrot.slane %v816_v48, 1 }
  0xa4   : > { %v3739_v16 = vsel %vm526_vm1, 0.0, %v4484_v42  ;;  %v4485_v27 = vrot.slane %v3291_v26, 7  ;;  %v4486_v21 = vrot.slane %v3288_v30, 7  ;;  %v981_v12 = vrot.slane %v3632_v40, 7 }
  0xa5   : > { %v3748_v8 = vpop.permute.xlu0 %1322  ;;  %v1230_v17 = vpack.c.bf16 %v817_v24, %v816_v48  ;;  %v1248_v39 = vpack.c.bf16 %v3744_v19, %v3742_v50  ;;  %v1105_v63 = vrot.slane %v817_v24, 1  ;;  %v4488_v28 = vrot.slane %v3269_v57, 7 }
  0xa6   : > { %v3761_v61 = vsel %vm526_vm1, %v4486_v21, %v4485_v27  ;;  %v4487_v18 = vmov %v4486_v21  ;;  %v4489_v42 = vrot.slane %v3266_v9, 7  ;;  %v982_v48 = vrot.slane %v3637_v2, 7 }
  0xa7   : > { %v3766_v3 = vsel %vm526_vm1, 0.0, %v4487_v18  ;;  %v984_v18 = vrot.slane %v3659_v22, 7  ;;  %v985_v24 = vrot.slane %v3661_v58, 7  ;;  %1302 = vrot.lane.b32.xlu0 %v1230_v17, %s2878_s30  ;;  %1356 = vrot.lane.b32.xlu1 %v1248_v39, %s2877_s26  ;;  %v1194_v9 = vsel %vm635_vm0, %v1105_v63, 0.0 }
  0xa8   : > { %v3778_v30 = vsel %vm526_vm1, %v4489_v42, %v4488_v28  ;;  %v4490_v27 = vmov %v4489_v42  ;;  %v1106_v28 = vsel %vm635_vm0, %v1104_v34, %v1105_v63  ;;  %v3796_v42 = vsel %vm1446_vm2, %v1221_v10, %v1321_v23  ;;  %v3805_v39 = vpop.permute.xlu1 %1360 }
  0xa9   : > { %v3783_v21 = vsel %vm526_vm1, 0.0, %v4490_v27  ;;  %v4491_v27 = vrot.slane %v3356_v35, 7  ;;  %v4492_v47 = vrot.slane %v3354_v52, 7  ;;  %v1266_v17 = vpack.c.bf16 %v1194_v9, %v1106_v28  ;;  %v3807_v46 = vpop.permute.xlu0 %1376 }
  0xaa   : > { %v4494_v10 = vrot.slane %v3366_v36, 7  ;;  %v4495_v23 = vrot.slane %v3360_v1, 7  ;;  %v484_v36 = vmul.f32 0.75, %v3518_v25  ;;  %v487_v9 = vstv %s475_s17  ;;  %s2523_s17 = sshll.u32 %s2863_s22, 6  ;;  %s2297_s22 = sshll.u32 %s4264_s9, 4  ;;  %s4391_s22 = int_to_ptr.vmem [resolvable:$true] %s2297_s22 }
  0xab   : > { %v3803_v26 = vsel %vm526_vm1, %v4492_v47, %v4491_v27  ;;  %v4493_v57 = vmov %v4492_v47  ;;  %1410 = vrot.lane.b32.xlu0 %v1266_v17, %s2879_s13  ;;  %v3838_v1 = vsel %vm526_vm1, %v1002_v7, %v1003_v37  ;;  %v3843_v27 = vsel %vm526_vm1, 0.0, %v1002_v7  ;;  %v4499_v17 = vld [vmem:[#allocation6_spill] sm:$0xff]  ;;  %s2783_s8 = scalar_lea.vmem %s4391_s22, 4096 }
  0xac   : > { %v3812_v34 = vsel %vm526_vm1, 0.0, %v4493_v57  ;;  %v3819_v35 = vsel %vm526_vm1, %v4495_v23, %v4494_v10  ;;  %v4496_v47 = vmov %v4495_v23  ;;  %v483_v57 = vmul.f32 0.75, %v3506_v51  ;;  %v4497_v51 = vld [vmem:[#allocation8_spill] sm:$0xff]  ;;  %p2784_p6 = scmp.ne.s32.totalorder %s4391_s22, %s2783_s8 }
  0xad   : > { %v3824_v63 = vsel %vm526_vm1, 0.0, %v4496_v47  ;;  %v1215_v28 = vpack.c.bf16 %v3803_v26, %v3812_v34  ;;  %v4498_v10 = vrot.slane %v4497_v51, 7  ;;  %v486_v47 = vadd.f32 %v484_v36, %v4500_v20 }
  0xae   : > { %v485_v23 = vadd.f32 %v483_v57, %v4499_v17  ;;  %v3891_v59 = vsel %vm526_vm1, 0.0, %v978_v49  ;;  %v3905_v62 = vsel %vm526_vm1, 0.0, %v1008_v0  ;;  %v3930_v43 = vsel %vm526_vm1, %v981_v12, %v982_v48  ;;  %p2785_p7 = pnand %p2784_p6, %p2963_p3 }
  0xaf   : > { %v3850_v25 = vsel %vm526_vm1, %v4498_v10, %v1000_v13  ;;  %v4501_v52 = vmov %v4498_v10  ;;  %v4502_v13 = vrot.slane %v3497_v4, 7  ;;  %v489_v32 = vmul.f32 %v487_v9, %v486_v47  ;;  %v3886_v17 = vpop.permute.xlu1 %1326  ;;  %v1307_v20 = vpop.permute.xlu0 %1306 }
  0xb0   : > { %v3859_v55 = vsel %vm526_vm1, 0.0, %v4501_v52  ;;  %v3880_v52 = vsel %vm526_vm1, %v978_v49, %v979_v6  ;;  %v488_v51 = vmul.f32 %v487_v9, %v485_v23  ;;  %v961_v4 = vrot.slane %v3744_v19, 7  ;;  %p2786_p9 = pneg %p2785_p7 }
  0xb1   : > { %v3868_v7 = vsel %vm526_vm1, %v4502_v13, %v976_v60  ;;  %v4503_v57 = vmov %v4502_v13  ;;  %v960_v60 = vrot.slane %v3742_v50, 7  ;;  %v3898_v6 = vsel %vm526_vm1, %v1008_v0, %v1009_v54 }
  0xb2   : > { %v3873_v36 = vsel %vm526_vm1, 0.0, %v4503_v57  ;;  %v578_v9 = vrot.slane %v488_v51, 7  ;;  %v579_v23 = vrot.slane %v489_v32, 7  ;;  %v814_v50 = vmul.f32 0.75, %v488_v51 }
  0xb3   : > { %v815_v47 = vmul.f32 0.75, %v489_v32  ;;  %v687_v19 = vrot.slane %v488_v51, 1  ;;  %v688_v13 = vrot.slane %v489_v32, 1  ;;  %v1228_v54 = vpack.c.bf16 %v3898_v6, %v3905_v62 }
  0xb4   : > { %v580_v31 = vsel %vm526_vm1, %v578_v9, %v579_v23  ;;  %v634_v49 = vsel %vm526_vm1, %v488_v51, %v578_v9  ;;  %v3916_v10 = vsel %vm526_vm1, %v1005_v15, %v1006_v5  ;;  %v3923_v51 = vsel %vm526_vm1, 0.0, %v1005_v15 }
  0xb5   : > { %v778_v57 = vmul.f32 0.25, %v634_v49  ;;  %v779_v37 = vmul.f32 0.25, %v580_v31  ;;  %v689_v41 = vsel %vm635_vm0, %v687_v19, %v688_v13  ;;  %v743_v0 = vsel %vm635_vm0, %v688_v13, %v489_v32 }
  0xb6   : > { %v886_v53 = vmul.f32 0.25, %v689_v41  ;;  %v887_v23 = vmul.f32 0.25, %v743_v0  ;;  %v1305_v5 = vpop.permute.xlu1 %1304  ;;  %v1325_v9 = vpop.permute.xlu0 %1324  ;;  %v1227_v32 = vpack.c.bf16 %v3916_v10, %v3923_v51  ;;  %v3937_v33 = vsel %vm526_vm1, 0.0, %v981_v12 }
  0xb7   : > { %v850_v31 = vadd.f32 %v814_v50, %v778_v57  ;;  %v851_v19 = vadd.f32 %v815_v47, %v779_v37  ;;  %v1219_v57 = vpack.c.bf16 %v3930_v43, %v3937_v33  ;;  %v1521_v37 = vsel %vm1501_vm3, %v3796_v42, %v3746_v14 }
  0xb8   : > { %v3939_v15 = vadd.f32 %v886_v53, %v814_v50  ;;  %v3941_v2 = vadd.f32 %v887_v23, %v815_v47  ;;  %v3955_v12 = vsel %vm526_vm1, %v984_v18, %v985_v24  ;;  %v3963_v14 = vsel %vm526_vm1, 0.0, %v984_v18 }
  0xb9   : > { %v1155_v13 = vrot.slane %v850_v31, 1  ;;  %v1247_v48 = vpack.c.bf16 %v851_v19, %v850_v31  ;;  %v1156_v49 = vrot.slane %v851_v19, 1  ;;  %v3966_v42 = vsel %vm526_vm1, %v960_v60, %v961_v4  ;;  %v2781_v19 = vld [vmem:[%s4452_s3] sm:$0xff]  }
  0xba   : > { %v1265_v40 = vpack.c.bf16 %v3941_v2, %v3939_v15  ;;  %v1429_v53 = vpop.permute.xlu1 %1428  ;;  %v1220_v0 = vpack.c.bf16 %v3955_v12, %v3963_v14  ;;  %v3975_v23 = vsel %vm526_vm1, 0.0, %v960_v60  ;;  %v1479_v18 = vsel %vm1446_vm2, %v1222_v56, %v3748_v8 }
  0xbb   : > { %1336 = vrot.lane.b32.xlu1 %v1247_v48, %s2878_s30  ;;  %v1157_v50 = vsel %vm635_vm0, %v1155_v13, %v1156_v49  ;;  %v1211_v47 = vsel %vm635_vm0, %v1156_v49, 0.0  ;;  %v3969_v58 = vsel %vm1538_vm4, %v1521_v37, %v1429_v53  ;;  %v1379_v24 = vpop.permute.xlu0 %1378  ;;  %v1212_v22 = vpack.c.bf16 %v3966_v42, %v3975_v23 }
  0xbc   : > { %1390 = vrot.lane.b32.xlu0 %v1265_v40, %s2877_s26  ;;  %v1283_v41 = vpack.c.bf16 %v1211_v47, %v1157_v50  ;;  %2610 = vmatprep.mubr.msk.bf16.mxu1 %vm1596_vm5, %v3969_v58  ;;  %v1523_v31 = vsel %vm1501_vm3, %v1479_v18, %v3807_v46  ;;  %v4504_v48 = vpack.c.bf16 %v3734_v38, %v3739_v16  ;;  %v4506_v46 = vld [vmem:[#allocation9_spill] sm:$0xff]  ;;  %s2294_s26 = sadd.s32 %s2535_s15, %s2523_s17  ;;  %s2787_s15 = sshll.u32 %s2880_s10, 4  ;;  %s2788_s15 = int_to_ptr.vmem [resolvable:$false] %s2787_s15 }
  0xbd   : > { %v4505_v45 = vpack.c.bf16 %v3761_v61, %v3766_v3  ;;  %v4507_v3 = vld [vmem:[#allocation10_spill] sm:$0xff]  ;;  %v4508_v40 = vpack.c.bf16 %v3778_v30, %v3783_v21  ;;  %v4509_v30 = vpack.c.bf16 %v3715_v29, %v3724_v11  ;;  %s2524_s21 = sshll.u32 %s2294_s26, 7  ;;  %s2789_s17 = scalar_lea.vmem %s2788_s15, 8192 }
  0xbe   : > { %v1359_v4 = vpop.permute.xlu1 %1358  ;;  %v1455_v44 = vsel %vm1446_vm2, %v4504_v48, %v1307_v20  ;;  %v2782_v20 = vld [vmem:[%s4452_s3 + $0x20] sm:$0xff]   ;;  %s4387_s14 = scalar_lea.hbm %s4454_s5, %s2524_s21  ;;  %p2790_p10 = scmp.lt.s32.totalorder %s4391_s22, %s2788_s15 }
  0xbf   : > { %1444 = vrot.lane.b32.xlu1 %v1283_v41, %s2879_s13  ;;  %v1431_v60 = vpop.permute.xlu0 %1430  ;;  %v1452_v56 = vsel %vm1446_vm2, %v4505_v45, %v1305_v5  ;;  %v1507_v38 = vsel %vm1501_vm3, %v1455_v44, %v3805_v39  ;;  %v1482_v53 = vsel %vm1446_vm2, %v4508_v40, %v1325_v9  ;;  %v1485_v21 = vsel %vm1446_vm2, %v4509_v30, %v3886_v17  ;;  %p2791_p11 = scmp.lt.s32.totalorder %s2789_s17, %s2783_s8 }
  0xc0   : > { %v3993_v13 = vsel %vm1538_vm4, %v1523_v31, %v1431_v60  ;;  %v1505_v49 = vsel %vm1501_vm3, %v1452_v56, %v1359_v4  ;;  %v1525_v50 = vsel %vm1501_vm3, %v1482_v53, %v1379_v24  ;;  %v1011_v4 = vrot.slane %v3939_v15, 7 }
  0xc1   : > { %2611 = vmatmul.mubr.msk.bf16.vlgmr.msra.gmra.mxu1 %vm1596_vm5, %v3993_v13  ;;  %v1012_v31 = vrot.slane %v3941_v2, 7  ;;  %v4510_v45 = vpack.c.bf16 %v3819_v35, %v3824_v63  ;;  %p2792_p12 = por %p2791_p11, %p2790_p10 }
  0xc2   : > { %v1415_v8 = vpop.permute.xlu1 %1414  ;;  %2627 = vmatpush3.bf16.msra.mxu1 %v4506_v46  ;;  %v4045_v48 = vsel %vm526_vm1, 0.0, %v1011_v4 }
  0xc3   : > { %v1413_v37 = vpop.permute.xlu0 %1412  ;;  %2628 = vmatprep.subr.bf16.mxu1 %v2781_v19  ;;  %v4016_v61 = vsel %vm1538_vm4, %v1507_v38, %v1415_v8  ;;  %p2793_p13 = pnand %p2792_p12, %p2786_p9 }
  0xc4   : > { %v4010_v16 = vsel %vm1538_vm4, %v1505_v49, %v1413_v37  ;;  %v4511_v37 = vpack.c.bf16 %v3850_v25, %v3859_v55 }
  0xc5   : > { %2594 = vmatprep.mubr.msk.bf16.mxu0 %vm1596_vm5, %v4010_v16 }
  0xc6   : > { %2595 = vmatmul.mubr.msk.bf16.vlgmr.msra.gmra.mxu0 %vm1596_vm5, %v4016_v61  ;;  %2629 = vmatpush3.bf16.msra.mxu1 %v2781_v19  ;;  %v4042_v19 = vsel %vm526_vm1, %v1011_v4, %v1012_v31  ;;  %v4513_v31 = vpack.c.bf16 %v3880_v52, %v3891_v59 }
  0xc7   : > { %2663 = vmatpush3.bf16.msra.mxu0 %v4507_v3  ;;  %v1381_v5 = vpop.permute.xlu0 %1380  ;;  %v1229_v2 = vpack.c.bf16 %v4042_v19, %v4045_v48 }
  0xc8   : > { %v1309_v39 = vpop.permute.xlu1 %1308  ;;  %2664 = vmatprep.subr.bf16.mxu0 %v2782_v20  ;;  %v1527_v9 = vsel %vm1501_vm3, %v1485_v21, %v1381_v5 }
  0xc9   : > { %v1458_v29 = vsel %vm1446_vm2, %v1215_v28, %v1309_v39 }
  0xcb   : > { %2665 = vmatpush3.bf16.msra.mxu0 %v2782_v20 }
  0xcc   : > { %v1433_v47 = vpop.permute.xlu1 %1432 }
  0xcd   : > { %v4029_v41 = vsel %vm1538_vm4, %v1525_v50, %v1433_v47  ;;  %v1311_v18 = vpop.permute.xlu0 %1310  ;;  %v4512_v50 = vpack.c.bf16 %v3838_v1, %v3843_v27  ;;  %v4514_v1 = vpack.c.bf16 %v3868_v7, %v3873_v36 }
  0xce   : > { %2614 = vmatprep.mubr.msk.bf16.mxu1 %vm1596_vm5, %v4029_v41  ;;  %v1461_v56 = vsel %vm1446_vm2, %v4510_v45, %v1311_v18 }
  0xd0   : > { %v1363_v60 = vpop.permute.xlu1 %1362 }
  0xd1   : > { %v1435_v24 = vpop.permute.xlu0 %1434  ;;  %v1509_v11 = vsel %vm1501_vm3, %v1458_v29, %v1363_v60 }
  0xd2   : > { %v4048_v15 = vsel %vm1538_vm4, %v1527_v9, %v1435_v24 }
  0xd3   : > { %2615 = vmatmul.mubr.msk.bf16.gmra.mxu1 %vm1596_vm5, %v4048_v15 }
  0xd4   : > { %v1365_v44 = vpop.permute.xlu1 %1364 }
  0xd5   : > { %v1417_v17 = vpop.permute.xlu0 %1416  ;;  %v1511_v46 = vsel %vm1501_vm3, %v1461_v56, %v1365_v44 }
  0xd6   : > { %v4064_v8 = vsel %vm1538_vm4, %v1509_v11, %v1417_v17 }
  0xd7   : > { %2598 = vmatprep.mubr.msk.bf16.mxu0 %vm1596_vm5, %v4064_v8 }
  0xd8   : > { %v1419_v49 = vpop.permute.xlu1 %1418 }
  0xd9   : > { %v4070_v26 = vsel %vm1538_vm4, %v1511_v46, %v1419_v49 }
  0xda   : > { %2599 = vmatmul.mubr.msk.bf16.gmra.mxu0 %vm1596_vm5, %v4070_v26 }
  0xdc   : > { %v1331_v34 = vpop.permute.xlu1 %1330 }
  0xdd   : > { %v1329_v28 = vpop.permute.xlu0 %1328  ;;  %v1491_v47 = vsel %vm1446_vm2, %v4512_v50, %v1331_v34 }
  0xde   : > { %v1488_v38 = vsel %vm1446_vm2, %v4511_v37, %v1329_v28 }
  0xe0   : > { %v1313_v35 = vpop.permute.xlu1 %1312 }
  0xe1   : > { %v1464_v27 = vsel %vm1446_vm2, %v4514_v1, %v1313_v35 }
  0xe3   : > { %v1383_v63 = vpop.permute.xlu0 %1382 }
  0xe4   : > { %v1529_v20 = vsel %vm1501_vm3, %v1488_v38, %v1383_v63  ;;  %v1437_v3 = vpop.permute.xlu1 %1436 }
  0xe5   : > { %v4080_v39 = vsel %vm1538_vm4, %v1529_v20, %v1437_v3 }
  0xe6   : > { %2618 = vmatprep.mubr.msk.bf16.mxu1 %vm1596_vm5, %v4080_v39 }
  0xe7   : > { %v1385_v5 = vpop.permute.xlu0 %1384 }
  0xe8   : > { %v1367_v40 = vpop.permute.xlu1 %1366  ;;  %v1531_v55 = vsel %vm1501_vm3, %v1491_v47, %v1385_v5 }
  0xe9   : > { %v1513_v9 = vsel %vm1501_vm3, %v1464_v27, %v1367_v40 }
  0xec   : > { %v1315_v53 = vpop.permute.xlu0 %1314 }
  0xed   : > { %v1467_v60 = vsel %vm1446_vm2, %v4513_v31, %v1315_v53 }
  0xef   : > { %v1369_v25 = vpop.permute.xlu1 %1368 }
  0xf0   : > { %v1439_v18 = vpop.permute.xlu0 %1438  ;;  %v1515_v30 = vsel %vm1501_vm3, %v1467_v60, %v1369_v25 }
  0xf1   : > { %v4090_v4 = vsel %vm1538_vm4, %v1531_v55, %v1439_v18 }
  0xf2   : > { %2619 = vmatmul.mubr.msk.bf16.gmra.mxu1 %vm1596_vm5, %v4090_v4 }
  0xf3   : > { %v1423_v21 = vpop.permute.xlu1 %1422 }
  0xf4   : > { %v1552_v24 = vsel %vm1538_vm4, %v1515_v30, %v1423_v21  ;;  %v1421_v44 = vpop.permute.xlu0 %1420 }
  0xf5   : > { %v1550_v52 = vsel %vm1538_vm4, %v1513_v9, %v1421_v44 }
  0xf6   : > { %2602 = vmatprep.mubr.msk.bf16.mxu0 %vm1596_vm5, %v1550_v52 }
  0xf7   : > { %2603 = vmatmul.mubr.msk.bf16.gmra.mxu0 %vm1596_vm5, %v1552_v24  ;;  %v1335_v59 = vpop.permute.xlu1 %1334 }
  0xf8   : > { %v1497_v10 = vsel %vm1446_vm2, %v1228_v54, %v1335_v59 }
  0xfa   : > { %v1333_v29 = vpop.permute.xlu0 %1332 }
  0xfb   : > { %v1317_v11 = vpop.permute.xlu1 %1316  ;;  %v1494_v7 = vsel %vm1446_vm2, %v1227_v32, %v1333_v29 }
  0xfc   : > { %v1470_v6 = vsel %vm1446_vm2, %v1219_v57, %v1317_v11 }
  0xff   : > { %v1387_v36 = vpop.permute.xlu0 %1386  ;;  %v1441_v45 = vpop.permute.xlu1 %1440 }
 0x100   : > { %v1533_v17 = vsel %vm1501_vm3, %v1494_v7, %v1387_v36 }
 0x101   : > { %v4114_v56 = vsel %vm1538_vm4, %v1533_v17, %v1441_v45 }
 0x102   : > { %2622 = vmatprep.mubr.msk.bf16.mxu1 %vm1596_vm5, %v4114_v56 }
 0x103   : > { %v1389_v46 = vpop.permute.xlu0 %1388 }
 0x104   : > { %v1371_v49 = vpop.permute.xlu1 %1370  ;;  %v1535_v51 = vsel %vm1501_vm3, %v1497_v10, %v1389_v46  ;;  %v4258_v46 = vld [vmem:[%s4453_s4] ss:$0 sm:$0xff] }
 0x105   : > { %v1517_v54 = vsel %vm1501_vm3, %v1470_v6, %v1371_v49 }
 0x109   : > { %v1319_v34 = vpop.permute.xlu0 %1318 }
 0x10a   : > { %v1373_v28 = vpop.permute.xlu1 %1372  ;;  %v1473_v37 = vsel %vm1446_vm2, %v1220_v0, %v1319_v34 }
 0x10b   : > { %v1519_v62 = vsel %vm1501_vm3, %v1473_v37, %v1373_v28 }
 0x10d   : > { %v1443_v32 = vpop.permute.xlu0 %1442 }
 0x10e   : > { %v1572_v35 = vsel %vm1538_vm4, %v1535_v51, %v1443_v32  ;;  %v1427_v63 = vpop.permute.xlu1 %1426 }
 0x10f   : > { %2623 = vmatmul.mubr.msk.bf16.gmra.mxu1 %vm1596_vm5, %v1572_v35  ;;  %v1556_v38 = vsel %vm1538_vm4, %v1519_v62, %v1427_v63 }
 0x111   : > { %v1425_v20 = vpop.permute.xlu0 %1424 }
 0x112   : > { %v1554_v3 = vsel %vm1538_vm4, %v1517_v54, %v1425_v20 }
 0x113   : > { %2606 = vmatprep.mubr.msk.bf16.mxu0 %vm1596_vm5, %v1554_v3 }
 0x114   : > { %2607 = vmatmul.mubr.msk.bf16.gmra.mxu0 %vm1596_vm5, %v1556_v38 }
 0x115   : > { %2666 = vmatprep.mubr.msk.bf16.mxu0 %vm1596_vm5, %v4016_v61 }
 0x119   : > { %v1303_v12 = vpop.permute.xlu0 %1302  ;;  %v1357_v33 = vpop.permute.xlu1 %1356 }
 0x11a   : > { %v1449_v43 = vsel %vm1446_vm2, %v1212_v22, %v1303_v12 }
 0x11b   : > { %v1503_v57 = vsel %vm1501_vm3, %v1449_v43, %v1357_v33 }
 0x11c   : > { %2667 = vmatmul.mubr.msk.bf16.vlgmr.msra.gmra.mxu0 %vm1596_vm5, %v4064_v8 }
 0x11d   : > { %v1411_v14 = vpop.permute.xlu0 %1410  ;;  %2670 = vmatprep.mubr.msk.bf16.mxu0 %vm1596_vm5, %v4070_v26 }
 0x11e   : > { %v1540_v0 = vsel %vm1538_vm4, %v1503_v57, %v1411_v14 }
 0x11f   : > { %2630 = vmatprep.mubr.msk.bf16.mxu1 %vm1596_vm5, %v1540_v0 }
 0x120   : > { %2631 = vmatmul.mubr.msk.bf16.vlgmr.msra.gmra.mxu1 %vm1596_vm5, %v4010_v16 }
 0x121   : > { %2634 = vmatprep.mubr.msk.bf16.mxu1 %vm1596_vm5, %v4016_v61 }
 0x124   : > { %2671 = vmatmul.mubr.msk.bf16.gmra.mxu0 %vm1596_vm5, %v1550_v52 }
 0x125   : > { %2674 = vmatprep.mubr.msk.bf16.mxu0 %vm1596_vm5, %v1552_v24 }
 0x128   : > { %2635 = vmatmul.mubr.msk.bf16.gmra.mxu1 %vm1596_vm5, %v4064_v8 }
 0x129   : > { %2638 = vmatprep.mubr.msk.bf16.mxu1 %vm1596_vm5, %v4070_v26 }
 0x12c   : > { %2675 = vmatmul.mubr.msk.bf16.gmra.mxu0 %vm1596_vm5, %v1554_v3 }
 0x12d   : > { %2678 = vmatprep.mubr.msk.bf16.mxu0 %vm1596_vm5, %v1556_v38  ;;  %v1337_v42 = vpop.permute.xlu1 %1336 }
 0x12e   : > { %v1391_v23 = vpop.permute.xlu0 %1390 }
 0x130   : > { %2639 = vmatmul.mubr.msk.bf16.gmra.mxu1 %vm1596_vm5, %v1550_v52 }
 0x131   : > { %2642 = vmatprep.mubr.msk.bf16.mxu1 %vm1596_vm5, %v1552_v24 }
 0x134   : > { %2679 = vmatmul.mubr.msk.bf16.gmra.mxu0 %vm1596_vm5, %v3969_v58 }
 0x135   : > { %2682 = vmatprep.mubr.msk.bf16.mxu0 %vm1596_vm5, %v3993_v13 }
 0x138   : > { %2643 = vmatmul.mubr.msk.bf16.gmra.mxu1 %vm1596_vm5, %v1554_v3 }
 0x139   : > { %2646 = vmatprep.mubr.msk.bf16.mxu1 %vm1596_vm5, %v1556_v38 }
 0x13c   : > { %2683 = vmatmul.mubr.msk.bf16.gmra.mxu0 %vm1596_vm5, %v4029_v41 }
 0x13d   : > { %2686 = vmatprep.mubr.msk.bf16.mxu0 %vm1596_vm5, %v4048_v15 }
 0x140   : > { %2647 = vmatmul.mubr.msk.bf16.gmra.mxu1 %vm1596_vm5, %v3969_v58  ;;  %v1500_v58 = vsel %vm1446_vm2, %v1229_v2, %v1337_v42 }
 0x141   : > { %2650 = vmatprep.mubr.msk.bf16.mxu1 %vm1596_vm5, %v3993_v13  ;;  %v1537_v22 = vsel %vm1501_vm3, %v1500_v58, %v1391_v23  ;;  %v1445_v13 = vpop.permute.xlu1 %1444 }
 0x142   : > { %v1574_v16 = vsel %vm1538_vm4, %v1537_v22, %v1445_v13 }
 0x144   : > { %2687 = vmatmul.mubr.msk.bf16.gmra.mxu0 %vm1596_vm5, %v4080_v39 }
 0x145   : > { %2690 = vmatprep.mubr.msk.bf16.mxu0 %vm1596_vm5, %v4090_v4 }
 0x148   : > { %2651 = vmatmul.mubr.msk.bf16.gmra.mxu1 %vm1596_vm5, %v4029_v41 }
 0x149   : > { %2654 = vmatprep.mubr.msk.bf16.mxu1 %vm1596_vm5, %v4048_v15 }
 0x14c   : > { %2691 = vmatmul.mubr.msk.bf16.gmra.mxu0 %vm1596_vm5, %v4114_v56 }
 0x14d   : > { %2694 = vmatprep.mubr.msk.bf16.mxu0 %vm1596_vm5, %v1572_v35 }
 0x150   : > { %2655 = vmatmul.mubr.msk.bf16.gmra.mxu1 %vm1596_vm5, %v4080_v39 }
 0x151   : > { %2658 = vmatprep.mubr.msk.bf16.mxu1 %vm1596_vm5, %v4090_v4 }
 0x154   : > { %2695 = vmatmul.mubr.msk.bf16.gmra.mxu0 %vm1596_vm5, %v1574_v16 }
 0x158   : > { %2659 = vmatmul.mubr.msk.bf16.gmra.mxu1 %vm1596_vm5, %v4114_v56 }
 0x181   : > { %v4204_v61 = vpop.f32.mrf.mxu1 }
 0x183   : > { %v4206_v41 = vpop.f32.mrf.mxu1 }
 0x185   : > { %v4208_v48 = vpop.f32.mrf.mxu1 }
 0x186   : > { %v2596_v19 = vpop.f32.mrf.mxu0 }
 0x187   : > { %v4210_v2 = vpop.f32.mrf.mxu1 }
 0x188   : > { %v1663_v15 = vpop.f32.mrf.mxu0 }
 0x18a   : > { %v2597_v8 = vpop.f32.mrf.mxu0 }
 0x18c   : > { %v1666_v39 = vpop.f32.mrf.mxu0 }
 0x193   : > { %v4212_v26 = vpop.f32.mrf.mxu1 }
 0x195   : > { %v4214_v5 = vpop.f32.mrf.mxu1 }
 0x197   : > { %v4216_v53 = vpop.f32.mrf.mxu1 }
 0x199   : > { %v4218_v47 = vpop.f32.mrf.mxu1 }
 0x19a   : > { %v2600_v40 = vpop.f32.mrf.mxu0 }
 0x19c   : > { %v1679_v50 = vpop.f32.mrf.mxu0 }
 0x19e   : > { %v2601_v25 = vpop.f32.mrf.mxu0 }
 0x1a0   : > { %v4222_v18 = vpop.f32.mrf.mxu0 }
 0x1b2   : > { %v4220_v55 = vpop.f32.mrf.mxu1 }
 0x1b4   : > { %v4224_v4 = vpop.f32.mrf.mxu1 }
 0x1b6   : > { %v4228_v60 = vpop.f32.mrf.mxu1 }
 0x1b7   : > { %v4226_v31 = vpop.f32.mrf.mxu0 }
 0x1b8   : > { %v4232_v27 = vpop.f32.mrf.mxu1 }
 0x1b9   : > { %v4230_v1 = vpop.f32.mrf.mxu0 }
 0x1bb   : > { %v4234_v30 = vpop.f32.mrf.mxu0 }
 0x1bd   : > { %v4238_v9 = vpop.f32.mrf.mxu0 }
 0x1cf   : > { %v4236_v21 = vpop.f32.mrf.mxu1 }
 0x1d1   : > { %v4240_v24 = vpop.f32.mrf.mxu1 }
 0x1d3   : > { %v4246_v59 = vpop.f32.mrf.mxu1 }
 0x1d4   : > { %v4242_v44 = vpop.f32.mrf.mxu0 }
 0x1d5   : > { %v4252_v7 = vpop.f32.mrf.mxu1 }
 0x1d6   : > { %v4244_v52 = vpop.f32.mrf.mxu0 }
 0x1d8   : > { %v4248_v29 = vpop.f32.mrf.mxu0 }
 0x1da   : > { %v4250_v11 = vpop.f32.mrf.mxu0 }
 0x1dc   : > { %v2668_v36 = vpop.f32.mrf.mxu0 }
 0x1de   : > { %v2018_v56 = vpop.f32.mrf.mxu0 }
 0x1e0   : > { %v2632_v17 = vpop.f32.mrf.mxu1  ;;  %v2669_v10 = vpop.f32.mrf.mxu0 }
 0x1e1   : > { %v1847_v45 = vadd.f32 %v2632_v17, %v2596_v19 }
 0x1e2   : > { %v1838_v49 = vpop.f32.mrf.mxu1  ;;  %v2021_v37 = vpop.f32.mrf.mxu0 }
 0x1e3   : > { %v2147_v34 = vadd.f32 %v2668_v36, %v1847_v45  ;;  %v1839_v28 = vadd.f32 %v1838_v49, %v1663_v15 }
 0x1e4   : > { %v2633_v51 = vpop.f32.mrf.mxu1  ;;  %v2672_v3 = vpop.f32.mrf.mxu0 }
 0x1e5   : > { %v2186_v32 = vadd.f32 %v4258_v46, %v2147_v34  ;;  %v2145_v35 = vadd.f32 %v2018_v56, %v1839_v28  ;;  %v1850_v63 = vadd.f32 %v2633_v51, %v2597_v8 }
 0x1e6   : > { %v1841_v6 = vpop.f32.mrf.mxu1  ;;  %v2034_v0 = vpop.f32.mrf.mxu0 }
 0x1e7   : > { %v2218_v62 = vmax.f32 %v2186_v32, 0.0  ;;  %v2184_v54 = vadd.f32 %v4258_v46, %v2145_v35  ;;  %v2148_v38 = vadd.f32 %v2669_v10, %v1850_v63  ;;  %v1842_v20 = vadd.f32 %v1841_v6, %v1666_v39 }
 0x1e8   : > { %v2636_v12 = vpop.f32.mrf.mxu1  ;;  %v2673_v16 = vpop.f32.mrf.mxu0 }
 0x1e9   : > { %2250 = vst.msk [vmem:[%s4264_s9 + $0x10] sm:$0xff] %vm1596_vm5, %v2218_v62  ;;  %v2216_v43 = vmax.f32 %v2184_v54, 0.0  ;;  %v2187_v33 = vadd.f32 %v4258_v46, %v2148_v38  ;;  %v2146_v57 = vadd.f32 %v2021_v37, %v1842_v20  ;;  %v1863_v14 = vadd.f32 %v2636_v12, %v2600_v40 }
 0x1ea   : > { %v1854_v42 = vpop.f32.mrf.mxu1  ;;  %v2037_v36 = vpop.f32.mrf.mxu0 }
 0x1eb   : > { %2248 = vst.msk [vmem:[%s4264_s9] sm:$0xff] %vm1596_vm5, %v2216_v43  ;;  %v2219_v58 = vmax.f32 %v2187_v33, 0.0  ;;  %v2185_v23 = vadd.f32 %v4258_v46, %v2146_v57  ;;  %v2151_v22 = vadd.f32 %v2672_v3, %v1863_v14  ;;  %v1855_v13 = vadd.f32 %v1854_v42, %v1679_v50 }
 0x1ec   : > { %v2637_v19 = vpop.f32.mrf.mxu1  ;;  %v2676_v34 = vpop.f32.mrf.mxu0 }
 0x1ed   : > { %2251 = vst.msk [vmem:[%s4264_s9 + $0x18] sm:$0xff] %vm1596_vm5, %v2219_v58  ;;  %v2217_v15 = vmax.f32 %v2185_v23, 0.0  ;;  %v2190_v8 = vadd.f32 %v4258_v46, %v2151_v22  ;;  %v2149_v39 = vadd.f32 %v2034_v0, %v1855_v13  ;;  %v1866_v40 = vadd.f32 %v2637_v19, %v2601_v25 }
 0x1ee   : > { %v1857_v17 = vpop.f32.mrf.mxu1  ;;  %v2050_v35 = vpop.f32.mrf.mxu0 }
 0x1ef   : > { %2249 = vst.msk [vmem:[%s4264_s9 + $0x8] sm:$0xff] %vm1596_vm5, %v2217_v15  ;;  %v2222_v45 = vmax.f32 %v2190_v8, 0.0  ;;  %v2188_v56 = vadd.f32 %v4258_v46, %v2149_v39  ;;  %v2152_v49 = vadd.f32 %v2673_v16, %v1866_v40  ;;  %v1858_v50 = vadd.f32 %v1857_v17, %v4222_v18 }
 0x1f0   : > { %v2640_v28 = vpop.f32.mrf.mxu1  ;;  %v2677_v54 = vpop.f32.mrf.mxu0 }
 0x1f1   : > { %2254 = vst.msk [vmem:[%s4264_s9 + $0x30] sm:$0xff] %vm1596_vm5, %v2222_v45  ;;  %v2220_v10 = vmax.f32 %v2188_v56, 0.0  ;;  %v2191_v51 = vadd.f32 %v4258_v46, %v2152_v49  ;;  %v2150_v25 = vadd.f32 %v2037_v36, %v1858_v50  ;;  %v1879_v32 = vadd.f32 %v2640_v28, %v4226_v31 }
 0x1f2   : > { %v1870_v63 = vpop.f32.mrf.mxu1  ;;  %v2053_v43 = vpop.f32.mrf.mxu0 }
 0x1f3   : > { %2252 = vst.msk [vmem:[%s4264_s9 + $0x20] sm:$0xff] %vm1596_vm5, %v2220_v10  ;;  %v2223_v37 = vmax.f32 %v2191_v51, 0.0  ;;  %v2189_v6 = vadd.f32 %v4258_v46, %v2150_v25  ;;  %v2155_v18 = vadd.f32 %v2676_v34, %v1879_v32  ;;  %v1871_v62 = vadd.f32 %v1870_v63, %v4230_v1 }
 0x1f4   : > { %v2641_v38 = vpop.f32.mrf.mxu1  ;;  %v2680_v42 = vpop.f32.mrf.mxu0 }
 0x1f5   : > { %2255 = vst.msk [vmem:[%s4264_s9 + $0x38] sm:$0xff] %vm1596_vm5, %v2223_v37  ;;  %v2221_v20 = vmax.f32 %v2189_v6, 0.0  ;;  %v2194_v3 = vadd.f32 %v4258_v46, %v2155_v18  ;;  %v2153_v31 = vadd.f32 %v2050_v35, %v1871_v62  ;;  %v1882_v12 = vadd.f32 %v2641_v38, %v4234_v30 }
 0x1f6   : > { %v1873_v33 = vpop.f32.mrf.mxu1  ;;  %v2066_v16 = vpop.f32.mrf.mxu0 }
 0x1f7   : > { %2253 = vst.msk [vmem:[%s4264_s9 + $0x28] sm:$0xff] %vm1596_vm5, %v2221_v20  ;;  %v2226_v57 = vmax.f32 %v2194_v3, 0.0  ;;  %v2192_v14 = vadd.f32 %v4258_v46, %v2153_v31  ;;  %v2156_v1 = vadd.f32 %v2677_v54, %v1882_v12  ;;  %v1874_v0 = vadd.f32 %v1873_v33, %v4238_v9 }
 0x1f8   : > { %v2644_v58 = vpop.f32.mrf.mxu1  ;;  %v2681_v40 = vpop.f32.mrf.mxu0 }
 0x1f9   : > { %2258 = vst.msk [vmem:[%s4264_s9 + $0x50] sm:$0xff] %vm1596_vm5, %v2226_v57  ;;  %v2224_v23 = vmax.f32 %v2192_v14, 0.0  ;;  %v2195_v22 = vadd.f32 %v4258_v46, %v2156_v1  ;;  %v2154_v30 = vadd.f32 %v2053_v43, %v1874_v0  ;;  %v1895_v13 = vadd.f32 %v2644_v58, %v4242_v44 }
 0x1fa   : > { %v1886_v19 = vpop.f32.mrf.mxu1  ;;  %v2069_v49 = vpop.f32.mrf.mxu0 }
 0x1fb   : > { %2256 = vst.msk [vmem:[%s4264_s9 + $0x40] sm:$0xff] %vm1596_vm5, %v2224_v23  ;;  %v2227_v15 = vmax.f32 %v2195_v22, 0.0  ;;  %v2193_v8 = vadd.f32 %v4258_v46, %v2154_v30  ;;  %v2159_v9 = vadd.f32 %v2680_v42, %v1895_v13  ;;  %v1887_v39 = vadd.f32 %v1886_v19, %v4244_v52 }
 0x1fc   : > { %v2645_v36 = vpop.f32.mrf.mxu1  ;;  %v2684_v51 = vpop.f32.mrf.mxu0 }
 0x1fd   : > { %2259 = vst.msk [vmem:[%s4264_s9 + $0x58] sm:$0xff] %vm1596_vm5, %v2227_v15  ;;  %v2225_v17 = vmax.f32 %v2193_v8, 0.0  ;;  %v2198_v45 = vadd.f32 %v4258_v46, %v2159_v9  ;;  %v2157_v44 = vadd.f32 %v2066_v16, %v1887_v39  ;;  %v1898_v56 = vadd.f32 %v2645_v36, %v4248_v29 }
 0x1fe   : > { %v1889_v50 = vpop.f32.mrf.mxu1  ;;  %v2082_v37 = vpop.f32.mrf.mxu0 }
 0x1ff   : > { %2257 = vst.msk [vmem:[%s4264_s9 + $0x48] sm:$0xff] %vm1596_vm5, %v2225_v17  ;;  %v2230_v34 = vmax.f32 %v2198_v45, 0.0  ;;  %v2196_v28 = vadd.f32 %v4258_v46, %v2157_v44  ;;  %v2160_v52 = vadd.f32 %v2681_v40, %v1898_v56  ;;  %v1890_v10 = vadd.f32 %v1889_v50, %v4250_v11 }
 0x200   : > { %v2648_v25 = vpop.f32.mrf.mxu1  ;;  %v2685_v38 = vpop.f32.mrf.mxu0 }
 0x201   : > { %2262 = vst.msk [vmem:[%s4264_s9 + $0x70] sm:$0xff] %vm1596_vm5, %v2230_v34  ;;  %v2228_v32 = vmax.f32 %v2196_v28, 0.0  ;;  %v2199_v35 = vadd.f32 %v4258_v46, %v2160_v52  ;;  %v2158_v29 = vadd.f32 %v2069_v49, %v1890_v10  ;;  %v1911_v63 = vadd.f32 %v2648_v25, %v4204_v61 }
 0x202   : > { %v1902_v6 = vpop.f32.mrf.mxu1  ;;  %v2085_v43 = vpop.f32.mrf.mxu0 }
 0x203   : > { %2260 = vst.msk [vmem:[%s4264_s9 + $0x60] sm:$0xff] %vm1596_vm5, %v2228_v32  ;;  %v2231_v18 = vmax.f32 %v2199_v35, 0.0  ;;  %v2197_v62 = vadd.f32 %v4258_v46, %v2158_v29  ;;  %v2163_v11 = vadd.f32 %v2684_v51, %v1911_v63  ;;  %v1903_v54 = vadd.f32 %v1902_v6, %v4206_v41 }
 0x204   : > { %v2649_v20 = vpop.f32.mrf.mxu1  ;;  %v2688_v0 = vpop.f32.mrf.mxu0 }
 0x205   : > { %2263 = vst.msk [vmem:[%s4264_s9 + $0x78] sm:$0xff] %vm1596_vm5, %v2231_v18  ;;  %v2229_v3 = vmax.f32 %v2197_v62, 0.0  ;;  %v2202_v31 = vadd.f32 %v4258_v46, %v2163_v11  ;;  %v2161_v61 = vadd.f32 %v2082_v37, %v1903_v54  ;;  %v1914_v12 = vadd.f32 %v2649_v20, %v4208_v48 }
 0x206   : > { %v1905_v33 = vpop.f32.mrf.mxu1  ;;  %v2098_v30 = vpop.f32.mrf.mxu0 }
 0x207   : > { %2261 = vst.msk [vmem:[%s4264_s9 + $0x68] sm:$0xff] %vm1596_vm5, %v2229_v3  ;;  %v2234_v57 = vmax.f32 %v2202_v31, 0.0  ;;  %v2200_v14 = vadd.f32 %v4258_v46, %v2161_v61  ;;  %v2164_v41 = vadd.f32 %v2685_v38, %v1914_v12  ;;  %v1906_v1 = vadd.f32 %v1905_v33, %v4210_v2 }
 0x208   : > { %v2652_v42 = vpop.f32.mrf.mxu1  ;;  %v2689_v8 = vpop.f32.mrf.mxu0 }
 0x209   : > { %2266 = vst.msk [vmem:[%s4264_s9 + $0x90] sm:$0xff] %vm1596_vm5, %v2234_v57  ;;  %v2232_v58 = vmax.f32 %v2200_v14, 0.0  ;;  %v2203_v23 = vadd.f32 %v4258_v46, %v2164_v41  ;;  %v2162_v48 = vadd.f32 %v2085_v43, %v1906_v1  ;;  %v1927_v22 = vadd.f32 %v2652_v42, %v4212_v26 }
 0x20a   : > { %v1918_v13 = vpop.f32.mrf.mxu1  ;;  %v2101_v17 = vpop.f32.mrf.mxu0 }
 0x20b   : > { %2264 = vst.msk [vmem:[%s4264_s9 + $0x80] sm:$0xff] %vm1596_vm5, %v2232_v58  ;;  %v2235_v16 = vmax.f32 %v2203_v23, 0.0  ;;  %v2201_v19 = vadd.f32 %v4258_v46, %v2162_v48  ;;  %v2167_v2 = vadd.f32 %v2688_v0, %v1927_v22  ;;  %v1919_v15 = vadd.f32 %v1918_v13, %v4214_v5 }
 0x20c   : > { %v2653_v9 = vpop.f32.mrf.mxu1  ;;  %v2692_v50 = vpop.f32.mrf.mxu0 }
 0x20d   : > { %2267 = vst.msk [vmem:[%s4264_s9 + $0x98] sm:$0xff] %vm1596_vm5, %v2235_v16  ;;  %v2233_v39 = vmax.f32 %v2201_v19, 0.0  ;;  %v2206_v40 = vadd.f32 %v4258_v46, %v2167_v2  ;;  %v2165_v26 = vadd.f32 %v2098_v30, %v1919_v15  ;;  %v1930_v36 = vadd.f32 %v2653_v9, %v4216_v53 }
 0x20e   : > { %v1921_v45 = vpop.f32.mrf.mxu1  ;;  %v2114_v51 = vpop.f32.mrf.mxu0 }
 0x20f   : > { %2265 = vst.msk [vmem:[%s4264_s9 + $0x88] sm:$0xff] %vm1596_vm5, %v2233_v39  ;;  %v2238_v44 = vmax.f32 %v2206_v40, 0.0  ;;  %v2204_v56 = vadd.f32 %v4258_v46, %v2165_v26  ;;  %v2168_v5 = vadd.f32 %v2689_v8, %v1930_v36  ;;  %v1922_v49 = vadd.f32 %v1921_v45, %v4218_v47 }
 0x210   : > { %v2656_v34 = vpop.f32.mrf.mxu1  ;;  %v2693_v63 = vpop.f32.mrf.mxu0 }
 0x211   : > { %2270 = vst.msk [vmem:[%s4264_s9 + $0xb0] sm:$0xff] %vm1596_vm5, %v2238_v44  ;;  %v2236_v28 = vmax.f32 %v2204_v56, 0.0  ;;  %v2207_v52 = vadd.f32 %v4258_v46, %v2168_v5  ;;  %v2166_v53 = vadd.f32 %v2101_v17, %v1922_v49  ;;  %v1943_v10 = vadd.f32 %v2656_v34, %v4220_v55 }
 0x212   : > { %v1934_v25 = vpop.f32.mrf.mxu1  ;;  %v2117_v11 = vpop.f32.mrf.mxu0 }
 0x213   : > { %2268 = vst.msk [vmem:[%s4264_s9 + $0xa0] sm:$0xff] %vm1596_vm5, %v2236_v28  ;;  %v2239_v32 = vmax.f32 %v2207_v52, 0.0  ;;  %v2205_v35 = vadd.f32 %v4258_v46, %v2166_v53  ;;  %v2171_v47 = vadd.f32 %v2692_v50, %v1943_v10  ;;  %v1935_v29 = vadd.f32 %v1934_v25, %v4224_v4 }
 0x214   : > { %v2657_v37 = vpop.f32.mrf.mxu1  ;;  %v2696_v31 = vpop.f32.mrf.mxu0 }
 0x215   : > { %2271 = vst.msk [vmem:[%s4264_s9 + $0xb8] sm:$0xff] %vm1596_vm5, %v2239_v32  ;;  %v2237_v6 = vmax.f32 %v2205_v35, 0.0  ;;  %v2210_v18 = vadd.f32 %v4258_v46, %v2171_v47  ;;  %v2169_v55 = vadd.f32 %v2114_v51, %v1935_v29  ;;  %v1946_v62 = vadd.f32 %v2657_v37, %v4228_v60 }
 0x216   : > { %v1937_v54 = vpop.f32.mrf.mxu1  ;;  %v2130_v57 = vpop.f32.mrf.mxu0 }
 0x217   : > { %2269 = vst.msk [vmem:[%s4264_s9 + $0xa8] sm:$0xff] %vm1596_vm5, %v2237_v6  ;;  %v2242_v38 = vmax.f32 %v2210_v18, 0.0  ;;  %v2208_v20 = vadd.f32 %v4258_v46, %v2169_v55  ;;  %v2172_v4 = vadd.f32 %v2693_v63, %v1946_v62  ;;  %v1938_v3 = vadd.f32 %v1937_v54, %v4232_v27 }
 0x218   : > { %v2660_v61 = vpop.f32.mrf.mxu1  ;;  %v2697_v58 = vpop.f32.mrf.mxu0 }
 0x219   : > { %2274 = vst.msk [vmem:[%s4264_s9 + $0xd0] sm:$0xff] %vm1596_vm5, %v2242_v38  ;;  %v2240_v12 = vmax.f32 %v2208_v20, 0.0  ;;  %v2211_v60 = vadd.f32 %v4258_v46, %v2172_v4  ;;  %v2170_v43 = vadd.f32 %v2117_v11, %v1938_v3  ;;  %v1959_v33 = vadd.f32 %v2660_v61, %v4236_v21 }
 0x21a   : > { %v1950_v14 = vpop.f32.mrf.mxu1  ;;  %v2133_v2 = vpop.f32.mrf.mxu0 }
 0x21b   : > { %2272 = vst.msk [vmem:[%s4264_s9 + $0xc0] sm:$0xff] %vm1596_vm5, %v2240_v12  ;;  %v2243_v41 = vmax.f32 %v2211_v60, 0.0  ;;  %v2209_v27 = vadd.f32 %v4258_v46, %v2170_v43  ;;  %v2175_v1 = vadd.f32 %v2696_v31, %v1959_v33  ;;  %v1951_v0 = vadd.f32 %v1950_v14, %v4240_v24 }
 0x21c   : > { %v2661_v42 = vpop.f32.mrf.mxu1 }
 0x21d   : > { %2275 = vst.msk [vmem:[%s4264_s9 + $0xd8] sm:$0xff] %vm1596_vm5, %v2243_v41  ;;  %v2241_v23 = vmax.f32 %v2209_v27, 0.0  ;;  %v2214_v21 = vadd.f32 %v4258_v46, %v2175_v1  ;;  %v2173_v48 = vadd.f32 %v2130_v57, %v1951_v0  ;;  %v1962_v22 = vadd.f32 %v2661_v42, %v4246_v59 }
 0x21e   : > { %v1953_v30 = vpop.f32.mrf.mxu1 }
 0x21f   : > { %2273 = vst.msk [vmem:[%s4264_s9 + $0xc8] sm:$0xff] %vm1596_vm5, %v2241_v23  ;;  %v2246_v24 = vmax.f32 %v2214_v21, 0.0  ;;  %v2212_v13 = vadd.f32 %v4258_v46, %v2173_v48  ;;  %v2176_v16 = vadd.f32 %v2697_v58, %v1962_v22  ;;  %v1954_v19 = vadd.f32 %v1953_v30, %v4252_v7 }
 0x221   : > { %2278 = vst.msk [vmem:[%s4264_s9 + $0xf0] sm:$0xff] %vm1596_vm5, %v2246_v24  ;;  %v2244_v15 = vmax.f32 %v2212_v13, 0.0  ;;  %v2215_v59 = vadd.f32 %v4258_v46, %v2176_v16  ;;  %v2174_v8 = vadd.f32 %v2133_v2, %v1954_v19 }
 0x223   : > { %2276 = vst.msk [vmem:[%s4264_s9 + $0xe0] sm:$0xff] %vm1596_vm5, %v2244_v15  ;;  %v2247_v9 = vmax.f32 %v2215_v59, 0.0  ;;  %v2213_v39 = vadd.f32 %v4258_v46, %v2174_v8 }
 0x225   : > { %2279 = vst.msk [vmem:[%s4264_s9 + $0xf8] sm:$0xff] %vm1596_vm5, %v2247_v9  ;;  %v2245_v7 = vmax.f32 %v2213_v39, 0.0 }
 0x227   : > { %2277 = vst.msk [vmem:[%s4264_s9 + $0xe8] sm:$0xff] %vm1596_vm5, %v2245_v7 }
 0x228   : > { %2796 = shalt.err (!%p2793_p13)
}
 0x229   : > { %s2797_s12 = scalar_lea.hbm %s4387_s14, 4096  ;;  %s2801_s21 = scalar_lea.hbm %s4454_s5, 16384 }
 0x22a   : > { %p2798_p0 = scmp.ne.s32.totalorder %s4387_s14, %s2797_s12  ;;  %p2802_p4 = scmp.lt.s32.totalorder %s4387_s14, %s4454_s5 }
 0x22b   : > { %p2803_p5 = scmp.lt.s32.totalorder %s2801_s21, %s2797_s12 }
 0x22c   : > { %p2799_p1 = pnand %p2798_p0, %p2963_p3 }
 0x22d   : > { %p2804_p6 = por %p2803_p5, %p2802_p4 }
 0x22e   : > { %p2800_p2 = pneg %p2799_p1 }
 0x230   : > { %p2805_p7 = pnand %p2804_p6, %p2800_p2 }
 0x232   : > { %2808 = shalt.err (!%p2805_p7)
}
 0x233   : > { %s2881_s8 = smov 128  }
 0x234   : > { %2702 = dma.vmem_to_hbm [thread:$0]  (%p2963_p3), %s4391_s22, 4096, %s4387_s14, %s4397_s16, %s2881_s8, %s2881_s8, %s2878_s30  }
 0x235 PF: > { %p2708_p9 = scmp.ge.s32.totalorder %s2875_s25, 2  ;;  %s2312_s10 = sand.u32 1, %s2847_s18  }
 0x236   : > { %s2313_s15 = scalar_lea.sflag [#allocation3], %s2312_s10 }
 0x237   : > { %p2705_p10 = pnand %p2708_p9, %p2972_p8 }
 0x239   : > { %p2706_p11 = pneg %p2705_p10 }
 0x23b   : > { %2842 = dma.done.wait (%p2706_p11), %s2313_s15, 4096  }
 0x23c   : > { %2844 = vsyncadd (%p2706_p11), %s2313_s15, 4294963200  ;;  %s18_s25 = sadd.s32 1, %s2875_s25   ;;  %s4515_s18 = smov %s2851_s19 }
 0x23d   : > { %p15_p12 = scmp.ge.s32.totalorder %s18_s25, 6   ;;  %s4516_s19 = smov %s2855_s20 }
 0x23e   : > { %s4517_s20 = smov %s2981_s11  ;;  %s4518_s21 = smov %s2867_s23 }
 0x23f   : > { %s4519_s22 = smov %s2871_s24  ;;  %s4520_s23 = smov %s4523_s28 }
 0x240   : > { %s4521_s24 = smov %s4527_s29  ;;  %17 = sbr.rel (!%p15_p12) target bundleno = 5 (0x5), region = 83 }
 0x245   :  { %2318 = vsyncpa [#allocation3], 1 }
 0x246   :  { %2320 = vsyncpa [#allocation3 + $0x1], 1 }

</bundles_post_ra>
